<compile_context>
chip_gen: v7x
topology: tpu7x:2x2x1
jax: 0.10.0
libtpu: 0.0.40
codegen_flags: <defaults>
</compile_context>

<pallas_src>
import functools

import jax
import jax.numpy as jnp
from jax.experimental import pallas as pl
from jax.experimental.pallas import tpu as pltpu

BN_EPS = 1e-5


def _residual_block_kernel(x_ref, w1_ref, b1_ref, w2_ref, b2_ref, o_ref,
                           *, H, W, HW_pad, B):
    """One grid step = B batch elements, lane-dense (C, HW_pad) layout.

    x_ref  : (B, Cin, HW_pad)   input images; channels on sublanes, pixels on lanes
    w1_ref : (Cout, 9*Cin)      conv1 weights with BN1 scale folded in
    b1_ref : (Cout, 1)          folded BN1 bias (includes conv1 bias)
    w2_ref : (Cout, 9*Cout)     conv2 weights with BN2 scale folded in
    b2_ref : (Cout, 1)          folded BN2 bias (includes conv2 bias)
    o_ref  : (B, Cout, HW_pad)  output
    """
    # ---- tap-validity masks from a lane iota (no HBM mask input) ----------
    idx = jax.lax.broadcasted_iota(jnp.int32, (1, HW_pad), 1)
    if W & (W - 1) == 0:                       # power-of-two width: bit ops
        row = jnp.right_shift(idx, W.bit_length() - 1)
        col = jnp.bitwise_and(idx, W - 1)
    else:
        row = idx // W
        col = idx % W
    row_ok = {-1: row >= 1, 0: None, 1: row <= H - 2}
    col_ok = {-1: col >= 1, 0: None, 1: col <= W - 2}
    masks = []
    for dh in (-1, 0, 1):
        for dw in (-1, 0, 1):
            ok = None
            for cond in (row_ok[dh], col_ok[dw]):
                if cond is not None:
                    ok = cond if ok is None else (ok & cond)
            masks.append(None if ok is None else ok.astype(jnp.float32))

    # ---- weights / biases hoisted out of the per-image loop ---------------
    w1 = w1_ref[...]
    b1 = b1_ref[...]
    w2 = w2_ref[...]
    b2 = b2_ref[...]

    def im2col(a):
        # Build the (9*C, HW_pad) stack of shifted, zero-masked 3x3 windows.
        taps = []
        t = 0
        for dh in (-1, 0, 1):
            for dw in (-1, 0, 1):
                off = dh * W + dw
                if off == 0:
                    taps.append(a)                              # center tap
                else:
                    shifted = pltpu.roll(a, (-off) % HW_pad, 1)  # XLU rotate
                    taps.append(shifted * masks[t])              # zero halo
                t += 1
        return jnp.concatenate(taps, axis=0)

    # ---- static unroll over the B images in this block --------------------
    # Unrolling lets the LLO scheduler interleave image i+1's im2col with
    # image i's MXU matmuls inside the same bundles.
    for b in range(B):
        x = x_ref[b]                                            # (Cin, HW_pad)

        # conv1 (3x3, pad 1) + folded BN1 + ReLU -- one MXU matmul, K = 9*Cin.
        h1 = jnp.dot(w1, im2col(x), preferred_element_type=jnp.float32)
        h1 = jnp.maximum(h1 + b1, 0.0)                          # (Cout, HW_pad)

        # conv2 (3x3, pad 1) + folded BN2 + residual + ReLU.
        y = jnp.dot(w2, im2col(h1), preferred_element_type=jnp.float32)
        y = y + b2 + x                                          # aligned residual
        o_ref[b] = jnp.maximum(y, 0.0).astype(o_ref.dtype)


def _pick_images_per_step(N, max_images=8):
    """Largest B <= max_images dividing N while keeping grid length >= 2."""
    if N <= 1:
        return max(N, 1)
    best = 1
    for b in range(1, min(N, max_images) + 1):
        if N % b == 0 and (N // b) >= 2:
            best = b
    return best


@jax.jit
def residual_block(x_nchw, w1_t, b1, w2_t, b2):
    """Forward pass of ResidualBlock (stride=1, downsample=None), NCHW in/out."""
    N, Cin, H, W = x_nchw.shape
    Cout = w1_t.shape[0]
    assert Cin == Cout, "stride=1 / downsample=None requires in_channels == out_channels"

    HW = H * W
    HW_pad = ((HW + 127) // 128) * 128           # keep lane axis 128-dense
    B = _pick_images_per_step(N)

    x_flat = x_nchw.reshape(N, Cin, HW)          # free reshape; no transpose
    if HW_pad != HW:
        x_flat = jnp.pad(x_flat, ((0, 0), (0, 0), (0, HW_pad - HW)))

    kernel = functools.partial(_residual_block_kernel, H=H, W=W,
                               HW_pad=HW_pad, B=B)

    grid_spec = pltpu.PrefetchScalarGridSpec(
        num_scalar_prefetch=0,
        grid=(N // B,),
        in_specs=[
            pl.BlockSpec((B, Cin, HW_pad), lambda n: (n, 0, 0)),
            pl.BlockSpec((Cout, 9 * Cin), lambda n: (0, 0)),
            pl.BlockSpec((Cout, 1), lambda n: (0, 0)),
            pl.BlockSpec((Cout, 9 * Cout), lambda n: (0, 0)),
            pl.BlockSpec((Cout, 1), lambda n: (0, 0)),
        ],
        out_specs=pl.BlockSpec((B, Cout, HW_pad), lambda n: (n, 0, 0)),
    )

    out_flat = pl.pallas_call(
        kernel,
        out_shape=jax.ShapeDtypeStruct((N, Cout, HW_pad), x_nchw.dtype),
        grid_spec=grid_spec,
        compiler_params=pltpu.CompilerParams(dimension_semantics=("parallel",)),
    )(x_flat, w1_t, b1, w2_t, b2)

    return out_flat[:, :, :HW].reshape(N, Cout, H, W)


def fold_conv_bn(w_hwio, conv_bias, gamma, beta, mean, var):
    """Fold eval-mode BatchNorm (and the conv bias) into conv weights + bias.

    Returns:
      w_t : (Cout, KH*KW*Cin)  scaled, transposed weights for the kernel matmul
      b   : (Cout, 1)          folded bias
    """
    scale = gamma / jnp.sqrt(var + BN_EPS)                     # (Cout,)
    bias = beta + scale * (conv_bias - mean)                   # (Cout,)
    kh, kw, cin, cout = w_hwio.shape
    w_t = (w_hwio.reshape(kh * kw * cin, cout) * scale[None, :]).T
    return w_t, bias.reshape(cout, 1)


def _reference_forward(x, w1, cb1, g1, be1, m1, v1, w2, cb2, g2, be2, m2, v2):
    """Pure-JAX reference (NCHW convs, unfolded BN) for correctness checking."""
    dn = ("NCHW", "HWIO", "NCHW")

    def bn(z, g, b, m, v):
        s = (g / jnp.sqrt(v + BN_EPS))[None, :, None, None]
        return (z - m[None, :, None, None]) * s + b[None, :, None, None]

    y = jax.lax.conv_general_dilated(x, w1, (1, 1), "SAME", dimension_numbers=dn)
    y = y + cb1[None, :, None, None]
    y = jnp.maximum(bn(y, g1, be1, m1, v1), 0.0)
    z = jax.lax.conv_general_dilated(y, w2, (1, 1), "SAME", dimension_numbers=dn)
    z = z + cb2[None, :, None, None]
    z = jnp.maximum(bn(z, g2, be2, m2, v2) + x, 0.0)
    return z


if __name__ == "__main__":
    # Small shapes: batch 8 (-> 4 images per grid step, grid length 2),
    # in_channels == out_channels == 8, 16x16 spatial (HW = 256 lanes).
    N, C, H, W = 8, 8, 16, 16
    key = jax.random.PRNGKey(0)
    keys = jax.random.split(key, 11)

    x = jax.random.normal(keys[0], (N, C, H, W), jnp.float32)

    # conv weights in HWIO (kh, kw, Cin, Cout), deterministic init
    w1 = jax.random.normal(keys[1], (3, 3, C, C), jnp.float32) * 0.1
    cb1 = jax.random.normal(keys[2], (C,), jnp.float32) * 0.1
    w2 = jax.random.normal(keys[3], (3, 3, C, C), jnp.float32) * 0.1
    cb2 = jax.random.normal(keys[4], (C,), jnp.float32) * 0.1

    # BatchNorm params / running stats (eval-mode semantics)
    g1 = 1.0 + 0.1 * jax.random.normal(keys[5], (C,), jnp.float32)
    be1 = 0.1 * jax.random.normal(keys[6], (C,), jnp.float32)
    m1 = 0.1 * jax.random.normal(keys[7], (C,), jnp.float32)
    v1 = 1.0 + 0.1 * jax.random.uniform(keys[8], (C,), jnp.float32)
    g2 = 1.0 + 0.1 * jax.random.normal(keys[9], (C,), jnp.float32)
    be2 = 0.1 * jax.random.normal(keys[10], (C,), jnp.float32)
    m2 = jnp.zeros((C,), jnp.float32)
    v2 = jnp.ones((C,), jnp.float32)

    w1_t, b1 = fold_conv_bn(w1, cb1, g1, be1, m1, v1)
    w2_t, b2 = fold_conv_bn(w2, cb2, g2, be2, m2, v2)

    out = residual_block(x, w1_t, b1, w2_t, b2)
    out = jax.block_until_ready(out)

    ref = jax.block_until_ready(
        _reference_forward(x, w1, cb1, g1, be1, m1, v1, w2, cb2, g2, be2, m2, v2))

    assert out.shape == (N, C, H, W)
    err = jnp.max(jnp.abs(out - ref))
    assert jnp.allclose(out, ref, rtol=1e-4, atol=1e-4), f"max abs err {err}"

    print("KERNEL_OK")
</pallas_src>

<mosaic_0001>
module attributes {stable_mosaic.version = 11 : i64} {
  func.func @_residual_block_kernel(%arg0: i32, %arg1: memref<4x8x256xf32, #tpu.memory_space<vmem>>, %arg2: memref<8x72xf32, #tpu.memory_space<vmem>>, %arg3: memref<8x1xf32, #tpu.memory_space<vmem>>, %arg4: memref<8x72xf32, #tpu.memory_space<vmem>>, %arg5: memref<8x1xf32, #tpu.memory_space<vmem>>, %arg6: memref<4x8x256xf32, #tpu.memory_space<vmem>>) attributes {dimension_semantics = [#tpu.dimension_semantics<parallel>], iteration_bounds = array<i64: 2>, scalar_prefetch = 0 : i64, scratch_operands = 0 : i64, tpu.core_type = #tpu.core_type<tc>, window_params = [{transform_indices = @transform_0, window_bounds = array<i64: 4, 8, 256>}, {pipeline_mode = #tpu.pipeline_mode<synchronous>, transform_indices = @transform_1, window_bounds = array<i64: 8, 72>}, {pipeline_mode = #tpu.pipeline_mode<synchronous>, transform_indices = @transform_2, window_bounds = array<i64: 8, 1>}, {pipeline_mode = #tpu.pipeline_mode<synchronous>, transform_indices = @transform_3, window_bounds = array<i64: 8, 72>}, {pipeline_mode = #tpu.pipeline_mode<synchronous>, transform_indices = @transform_4, window_bounds = array<i64: 8, 1>}, {transform_indices = @transform_5, window_bounds = array<i64: 4, 8, 256>}]} {
    %0 = tpu.iota {dimensions = array<i32: 1>} : vector<1x256xi32>
    %c4_i32 = arith.constant 4 : i32
    %1 = vector.broadcast %c4_i32 : i32 to vector<1x256xi32>
    %2 = arith.shrsi %0, %1 : vector<1x256xi32>
    %c15_i32 = arith.constant 15 : i32
    %3 = vector.broadcast %c15_i32 : i32 to vector<1x256xi32>
    %4 = arith.andi %0, %3 : vector<1x256xi32>
    %c1_i32 = arith.constant 1 : i32
    %5 = vector.broadcast %c1_i32 : i32 to vector<1x256xi32>
    %6 = arith.cmpi sge, %2, %5 : vector<1x256xi32>
    %c14_i32 = arith.constant 14 : i32
    %7 = vector.broadcast %c14_i32 : i32 to vector<1x256xi32>
    %8 = arith.cmpi sle, %2, %7 : vector<1x256xi32>
    %c1_i32_0 = arith.constant 1 : i32
    %9 = vector.broadcast %c1_i32_0 : i32 to vector<1x256xi32>
    %10 = arith.cmpi sge, %4, %9 : vector<1x256xi32>
    %c14_i32_1 = arith.constant 14 : i32
    %11 = vector.broadcast %c14_i32_1 : i32 to vector<1x256xi32>
    %12 = arith.cmpi sle, %4, %11 : vector<1x256xi32>
    %13 = arith.andi %6, %10 : vector<1x256xi1>
    %14 = arith.extui %13 : vector<1x256xi1> to vector<1x256xi32>
    %15 = arith.sitofp %14 : vector<1x256xi32> to vector<1x256xf32>
    %16 = arith.extui %6 : vector<1x256xi1> to vector<1x256xi32>
    %17 = arith.sitofp %16 : vector<1x256xi32> to vector<1x256xf32>
    %18 = arith.andi %6, %12 : vector<1x256xi1>
    %19 = arith.extui %18 : vector<1x256xi1> to vector<1x256xi32>
    %20 = arith.sitofp %19 : vector<1x256xi32> to vector<1x256xf32>
    %21 = arith.extui %10 : vector<1x256xi1> to vector<1x256xi32>
    %22 = arith.sitofp %21 : vector<1x256xi32> to vector<1x256xf32>
    %23 = arith.extui %12 : vector<1x256xi1> to vector<1x256xi32>
    %24 = arith.sitofp %23 : vector<1x256xi32> to vector<1x256xf32>
    %25 = arith.andi %8, %10 : vector<1x256xi1>
    %26 = arith.extui %25 : vector<1x256xi1> to vector<1x256xi32>
    %27 = arith.sitofp %26 : vector<1x256xi32> to vector<1x256xf32>
    %28 = arith.extui %8 : vector<1x256xi1> to vector<1x256xi32>
    %29 = arith.sitofp %28 : vector<1x256xi32> to vector<1x256xf32>
    %30 = arith.andi %8, %12 : vector<1x256xi1>
    %31 = arith.extui %30 : vector<1x256xi1> to vector<1x256xi32>
    %32 = arith.sitofp %31 : vector<1x256xi32> to vector<1x256xf32>
    %c0 = arith.constant 0 : index
    %c0_2 = arith.constant 0 : index
    %33 = vector.load %arg2[%c0, %c0_2] : memref<8x72xf32, #tpu.memory_space<vmem>>, vector<8x72xf32>
    %c0_3 = arith.constant 0 : index
    %c0_4 = arith.constant 0 : index
    %34 = vector.load %arg3[%c0_3, %c0_4] : memref<8x1xf32, #tpu.memory_space<vmem>>, vector<8x1xf32>
    %c0_5 = arith.constant 0 : index
    %c0_6 = arith.constant 0 : index
    %35 = vector.load %arg4[%c0_5, %c0_6] : memref<8x72xf32, #tpu.memory_space<vmem>>, vector<8x72xf32>
    %c0_7 = arith.constant 0 : index
    %c0_8 = arith.constant 0 : index
    %36 = vector.load %arg5[%c0_7, %c0_8] : memref<8x1xf32, #tpu.memory_space<vmem>>, vector<8x1xf32>
    %c0_9 = arith.constant 0 : index
    %c0_10 = arith.constant 0 : index
    %c0_11 = arith.constant 0 : index
    %37 = vector.load %arg1[%c0_9, %c0_10, %c0_11] : memref<4x8x256xf32, #tpu.memory_space<vmem>>, vector<1x8x256xf32>
    %38 = vector.shape_cast %37 : vector<1x8x256xf32> to vector<8x256xf32>
    %c17_i32 = arith.constant 17 : i32
    %39 = tpu.dynamic_rotate %38 by %c17_i32 dim 1 : vector<8x256xf32>, i32 -> vector<8x256xf32>
    %40 = vector.broadcast %15 : vector<1x256xf32> to vector<8x256xf32>
    %41 = arith.mulf %39, %40 : vector<8x256xf32>
    %c16_i32 = arith.constant 16 : i32
    %42 = tpu.dynamic_rotate %38 by %c16_i32 dim 1 : vector<8x256xf32>, i32 -> vector<8x256xf32>
    %43 = vector.broadcast %17 : vector<1x256xf32> to vector<8x256xf32>
    %44 = arith.mulf %42, %43 : vector<8x256xf32>
    %c15_i32_12 = arith.constant 15 : i32
    %45 = tpu.dynamic_rotate %38 by %c15_i32_12 dim 1 : vector<8x256xf32>, i32 -> vector<8x256xf32>
    %46 = vector.broadcast %20 : vector<1x256xf32> to vector<8x256xf32>
    %47 = arith.mulf %45, %46 : vector<8x256xf32>
    %c1_i32_13 = arith.constant 1 : i32
    %48 = tpu.dynamic_rotate %38 by %c1_i32_13 dim 1 : vector<8x256xf32>, i32 -> vector<8x256xf32>
    %49 = vector.broadcast %22 : vector<1x256xf32> to vector<8x256xf32>
    %50 = arith.mulf %48, %49 : vector<8x256xf32>
    %c255_i32 = arith.constant 255 : i32
    %51 = tpu.dynamic_rotate %38 by %c255_i32 dim 1 : vector<8x256xf32>, i32 -> vector<8x256xf32>
    %52 = vector.broadcast %24 : vector<1x256xf32> to vector<8x256xf32>
    %53 = arith.mulf %51, %52 : vector<8x256xf32>
    %c241_i32 = arith.constant 241 : i32
    %54 = tpu.dynamic_rotate %38 by %c241_i32 dim 1 : vector<8x256xf32>, i32 -> vector<8x256xf32>
    %55 = vector.broadcast %27 : vector<1x256xf32> to vector<8x256xf32>
    %56 = arith.mulf %54, %55 : vector<8x256xf32>
    %c240_i32 = arith.constant 240 : i32
    %57 = tpu.dynamic_rotate %38 by %c240_i32 dim 1 : vector<8x256xf32>, i32 -> vector<8x256xf32>
    %58 = vector.broadcast %29 : vector<1x256xf32> to vector<8x256xf32>
    %59 = arith.mulf %57, %58 : vector<8x256xf32>
    %c239_i32 = arith.constant 239 : i32
    %60 = tpu.dynamic_rotate %38 by %c239_i32 dim 1 : vector<8x256xf32>, i32 -> vector<8x256xf32>
    %61 = vector.broadcast %32 : vector<1x256xf32> to vector<8x256xf32>
    %62 = arith.mulf %60, %61 : vector<8x256xf32>
    %63 = tpu.concatenate %41, %44, %47, %50, %38, %53, %56, %59, %62 in 0 : vector<8x256xf32>, vector<8x256xf32>, vector<8x256xf32>, vector<8x256xf32>, vector<8x256xf32>, vector<8x256xf32>, vector<8x256xf32>, vector<8x256xf32>, vector<8x256xf32> -> vector<72x256xf32>
    %cst = arith.constant dense<0.000000e+00> : vector<8x256xf32>
    %64 = tpu.matmul %33, %63, %cst {dimension_numbers = #tpu.dot_dimension_numbers<[1], [0], [0], [1], [0, 0, 1, 1], [], []>} : vector<8x72xf32>, vector<72x256xf32>, vector<8x256xf32> -> vector<8x256xf32>
    %65 = vector.broadcast %34 : vector<8x1xf32> to vector<8x256xf32>
    %66 = arith.addf %64, %65 : vector<8x256xf32>
    %cst_14 = arith.constant 0.000000e+00 : f32
    %67 = vector.broadcast %cst_14 : f32 to vector<8x256xf32>
    %68 = arith.maximumf %66, %67 : vector<8x256xf32>
    %c17_i32_15 = arith.constant 17 : i32
    %69 = tpu.dynamic_rotate %68 by %c17_i32_15 dim 1 : vector<8x256xf32>, i32 -> vector<8x256xf32>
    %70 = vector.broadcast %15 : vector<1x256xf32> to vector<8x256xf32>
    %71 = arith.mulf %69, %70 : vector<8x256xf32>
    %c16_i32_16 = arith.constant 16 : i32
    %72 = tpu.dynamic_rotate %68 by %c16_i32_16 dim 1 : vector<8x256xf32>, i32 -> vector<8x256xf32>
    %73 = vector.broadcast %17 : vector<1x256xf32> to vector<8x256xf32>
    %74 = arith.mulf %72, %73 : vector<8x256xf32>
    %c15_i32_17 = arith.constant 15 : i32
    %75 = tpu.dynamic_rotate %68 by %c15_i32_17 dim 1 : vector<8x256xf32>, i32 -> vector<8x256xf32>
    %76 = vector.broadcast %20 : vector<1x256xf32> to vector<8x256xf32>
    %77 = arith.mulf %75, %76 : vector<8x256xf32>
    %c1_i32_18 = arith.constant 1 : i32
    %78 = tpu.dynamic_rotate %68 by %c1_i32_18 dim 1 : vector<8x256xf32>, i32 -> vector<8x256xf32>
    %79 = vector.broadcast %22 : vector<1x256xf32> to vector<8x256xf32>
    %80 = arith.mulf %78, %79 : vector<8x256xf32>
    %c255_i32_19 = arith.constant 255 : i32
    %81 = tpu.dynamic_rotate %68 by %c255_i32_19 dim 1 : vector<8x256xf32>, i32 -> vector<8x256xf32>
    %82 = vector.broadcast %24 : vector<1x256xf32> to vector<8x256xf32>
    %83 = arith.mulf %81, %82 : vector<8x256xf32>
    %c241_i32_20 = arith.constant 241 : i32
    %84 = tpu.dynamic_rotate %68 by %c241_i32_20 dim 1 : vector<8x256xf32>, i32 -> vector<8x256xf32>
    %85 = vector.broadcast %27 : vector<1x256xf32> to vector<8x256xf32>
    %86 = arith.mulf %84, %85 : vector<8x256xf32>
    %c240_i32_21 = arith.constant 240 : i32
    %87 = tpu.dynamic_rotate %68 by %c240_i32_21 dim 1 : vector<8x256xf32>, i32 -> vector<8x256xf32>
    %88 = vector.broadcast %29 : vector<1x256xf32> to vector<8x256xf32>
    %89 = arith.mulf %87, %88 : vector<8x256xf32>
    %c239_i32_22 = arith.constant 239 : i32
    %90 = tpu.dynamic_rotate %68 by %c239_i32_22 dim 1 : vector<8x256xf32>, i32 -> vector<8x256xf32>
    %91 = vector.broadcast %32 : vector<1x256xf32> to vector<8x256xf32>
    %92 = arith.mulf %90, %91 : vector<8x256xf32>
    %93 = tpu.concatenate %71, %74, %77, %80, %68, %83, %86, %89, %92 in 0 : vector<8x256xf32>, vector<8x256xf32>, vector<8x256xf32>, vector<8x256xf32>, vector<8x256xf32>, vector<8x256xf32>, vector<8x256xf32>, vector<8x256xf32>, vector<8x256xf32> -> vector<72x256xf32>
    %cst_23 = arith.constant dense<0.000000e+00> : vector<8x256xf32>
    %94 = tpu.matmul %35, %93, %cst_23 {dimension_numbers = #tpu.dot_dimension_numbers<[1], [0], [0], [1], [0, 0, 1, 1], [], []>} : vector<8x72xf32>, vector<72x256xf32>, vector<8x256xf32> -> vector<8x256xf32>
    %95 = vector.broadcast %36 : vector<8x1xf32> to vector<8x256xf32>
    %96 = arith.addf %94, %95 : vector<8x256xf32>
    %97 = arith.addf %96, %38 : vector<8x256xf32>
    %cst_24 = arith.constant 0.000000e+00 : f32
    %98 = vector.broadcast %cst_24 : f32 to vector<8x256xf32>
    %99 = arith.maximumf %97, %98 : vector<8x256xf32>
    %c0_25 = arith.constant 0 : index
    %c0_26 = arith.constant 0 : index
    %c0_27 = arith.constant 0 : index
    %100 = vector.load %arg6[%c0_25, %c0_26, %c0_27] : memref<4x8x256xf32, #tpu.memory_space<vmem>>, vector<1x8x256xf32>
    %101 = vector.shape_cast %100 : vector<1x8x256xf32> to vector<8x256xf32>
    %102 = vector.shape_cast %99 : vector<8x256xf32> to vector<1x8x256xf32>
    tpu.vector_store %arg6[%c0_25, %c0_26, %c0_27], %102 {strides = array<i32>} : memref<4x8x256xf32, #tpu.memory_space<vmem>>, vector<1x8x256xf32>,
    %c1 = arith.constant 1 : index
    %c0_28 = arith.constant 0 : index
    %c0_29 = arith.constant 0 : index
    %103 = vector.load %arg1[%c1, %c0_28, %c0_29] : memref<4x8x256xf32, #tpu.memory_space<vmem>>, vector<1x8x256xf32>
    %104 = vector.shape_cast %103 : vector<1x8x256xf32> to vector<8x256xf32>
    %c17_i32_30 = arith.constant 17 : i32
    %105 = tpu.dynamic_rotate %104 by %c17_i32_30 dim 1 : vector<8x256xf32>, i32 -> vector<8x256xf32>
    %106 = vector.broadcast %15 : vector<1x256xf32> to vector<8x256xf32>
    %107 = arith.mulf %105, %106 : vector<8x256xf32>
    %c16_i32_31 = arith.constant 16 : i32
    %108 = tpu.dynamic_rotate %104 by %c16_i32_31 dim 1 : vector<8x256xf32>, i32 -> vector<8x256xf32>
    %109 = vector.broadcast %17 : vector<1x256xf32> to vector<8x256xf32>
    %110 = arith.mulf %108, %109 : vector<8x256xf32>
    %c15_i32_32 = arith.constant 15 : i32
    %111 = tpu.dynamic_rotate %104 by %c15_i32_32 dim 1 : vector<8x256xf32>, i32 -> vector<8x256xf32>
    %112 = vector.broadcast %20 : vector<1x256xf32> to vector<8x256xf32>
    %113 = arith.mulf %111, %112 : vector<8x256xf32>
    %c1_i32_33 = arith.constant 1 : i32
    %114 = tpu.dynamic_rotate %104 by %c1_i32_33 dim 1 : vector<8x256xf32>, i32 -> vector<8x256xf32>
    %115 = vector.broadcast %22 : vector<1x256xf32> to vector<8x256xf32>
    %116 = arith.mulf %114, %115 : vector<8x256xf32>
    %c255_i32_34 = arith.constant 255 : i32
    %117 = tpu.dynamic_rotate %104 by %c255_i32_34 dim 1 : vector<8x256xf32>, i32 -> vector<8x256xf32>
    %118 = vector.broadcast %24 : vector<1x256xf32> to vector<8x256xf32>
    %119 = arith.mulf %117, %118 : vector<8x256xf32>
    %c241_i32_35 = arith.constant 241 : i32
    %120 = tpu.dynamic_rotate %104 by %c241_i32_35 dim 1 : vector<8x256xf32>, i32 -> vector<8x256xf32>
    %121 = vector.broadcast %27 : vector<1x256xf32> to vector<8x256xf32>
    %122 = arith.mulf %120, %121 : vector<8x256xf32>
    %c240_i32_36 = arith.constant 240 : i32
    %123 = tpu.dynamic_rotate %104 by %c240_i32_36 dim 1 : vector<8x256xf32>, i32 -> vector<8x256xf32>
    %124 = vector.broadcast %29 : vector<1x256xf32> to vector<8x256xf32>
    %125 = arith.mulf %123, %124 : vector<8x256xf32>
    %c239_i32_37 = arith.constant 239 : i32
    %126 = tpu.dynamic_rotate %104 by %c239_i32_37 dim 1 : vector<8x256xf32>, i32 -> vector<8x256xf32>
    %127 = vector.broadcast %32 : vector<1x256xf32> to vector<8x256xf32>
    %128 = arith.mulf %126, %127 : vector<8x256xf32>
    %129 = tpu.concatenate %107, %110, %113, %116, %104, %119, %122, %125, %128 in 0 : vector<8x256xf32>, vector<8x256xf32>, vector<8x256xf32>, vector<8x256xf32>, vector<8x256xf32>, vector<8x256xf32>, vector<8x256xf32>, vector<8x256xf32>, vector<8x256xf32> -> vector<72x256xf32>
    %cst_38 = arith.constant dense<0.000000e+00> : vector<8x256xf32>
    %130 = tpu.matmul %33, %129, %cst_38 {dimension_numbers = #tpu.dot_dimension_numbers<[1], [0], [0], [1], [0, 0, 1, 1], [], []>} : vector<8x72xf32>, vector<72x256xf32>, vector<8x256xf32> -> vector<8x256xf32>
    %131 = vector.broadcast %34 : vector<8x1xf32> to vector<8x256xf32>
    %132 = arith.addf %130, %131 : vector<8x256xf32>
    %cst_39 = arith.constant 0.000000e+00 : f32
    %133 = vector.broadcast %cst_39 : f32 to vector<8x256xf32>
    %134 = arith.maximumf %132, %133 : vector<8x256xf32>
    %c17_i32_40 = arith.constant 17 : i32
    %135 = tpu.dynamic_rotate %134 by %c17_i32_40 dim 1 : vector<8x256xf32>, i32 -> vector<8x256xf32>
    %136 = vector.broadcast %15 : vector<1x256xf32> to vector<8x256xf32>
    %137 = arith.mulf %135, %136 : vector<8x256xf32>
    %c16_i32_41 = arith.constant 16 : i32
    %138 = tpu.dynamic_rotate %134 by %c16_i32_41 dim 1 : vector<8x256xf32>, i32 -> vector<8x256xf32>
    %139 = vector.broadcast %17 : vector<1x256xf32> to vector<8x256xf32>
    %140 = arith.mulf %138, %139 : vector<8x256xf32>
    %c15_i32_42 = arith.constant 15 : i32
    %141 = tpu.dynamic_rotate %134 by %c15_i32_42 dim 1 : vector<8x256xf32>, i32 -> vector<8x256xf32>
    %142 = vector.broadcast %20 : vector<1x256xf32> to vector<8x256xf32>
    %143 = arith.mulf %141, %142 : vector<8x256xf32>
    %c1_i32_43 = arith.constant 1 : i32
    %144 = tpu.dynamic_rotate %134 by %c1_i32_43 dim 1 : vector<8x256xf32>, i32 -> vector<8x256xf32>
    %145 = vector.broadcast %22 : vector<1x256xf32> to vector<8x256xf32>
    %146 = arith.mulf %144, %145 : vector<8x256xf32>
    %c255_i32_44 = arith.constant 255 : i32
    %147 = tpu.dynamic_rotate %134 by %c255_i32_44 dim 1 : vector<8x256xf32>, i32 -> vector<8x256xf32>
    %148 = vector.broadcast %24 : vector<1x256xf32> to vector<8x256xf32>
    %149 = arith.mulf %147, %148 : vector<8x256xf32>
    %c241_i32_45 = arith.constant 241 : i32
    %150 = tpu.dynamic_rotate %134 by %c241_i32_45 dim 1 : vector<8x256xf32>, i32 -> vector<8x256xf32>
    %151 = vector.broadcast %27 : vector<1x256xf32> to vector<8x256xf32>
    %152 = arith.mulf %150, %151 : vector<8x256xf32>
    %c240_i32_46 = arith.constant 240 : i32
    %153 = tpu.dynamic_rotate %134 by %c240_i32_46 dim 1 : vector<8x256xf32>, i32 -> vector<8x256xf32>
    %154 = vector.broadcast %29 : vector<1x256xf32> to vector<8x256xf32>
    %155 = arith.mulf %153, %154 : vector<8x256xf32>
    %c239_i32_47 = arith.constant 239 : i32
    %156 = tpu.dynamic_rotate %134 by %c239_i32_47 dim 1 : vector<8x256xf32>, i32 -> vector<8x256xf32>
    %157 = vector.broadcast %32 : vector<1x256xf32> to vector<8x256xf32>
    %158 = arith.mulf %156, %157 : vector<8x256xf32>
    %159 = tpu.concatenate %137, %140, %143, %146, %134, %149, %152, %155, %158 in 0 : vector<8x256xf32>, vector<8x256xf32>, vector<8x256xf32>, vector<8x256xf32>, vector<8x256xf32>, vector<8x256xf32>, vector<8x256xf32>, vector<8x256xf32>, vector<8x256xf32> -> vector<72x256xf32>
    %cst_48 = arith.constant dense<0.000000e+00> : vector<8x256xf32>
    %160 = tpu.matmul %35, %159, %cst_48 {dimension_numbers = #tpu.dot_dimension_numbers<[1], [0], [0], [1], [0, 0, 1, 1], [], []>} : vector<8x72xf32>, vector<72x256xf32>, vector<8x256xf32> -> vector<8x256xf32>
    %161 = vector.broadcast %36 : vector<8x1xf32> to vector<8x256xf32>
    %162 = arith.addf %160, %161 : vector<8x256xf32>
    %163 = arith.addf %162, %104 : vector<8x256xf32>
    %cst_49 = arith.constant 0.000000e+00 : f32
    %164 = vector.broadcast %cst_49 : f32 to vector<8x256xf32>
    %165 = arith.maximumf %163, %164 : vector<8x256xf32>
    %c1_50 = arith.constant 1 : index
    %c0_51 = arith.constant 0 : index
    %c0_52 = arith.constant 0 : index
    %166 = vector.load %arg6[%c1_50, %c0_51, %c0_52] : memref<4x8x256xf32, #tpu.memory_space<vmem>>, vector<1x8x256xf32>
    %167 = vector.shape_cast %166 : vector<1x8x256xf32> to vector<8x256xf32>
    %168 = vector.shape_cast %165 : vector<8x256xf32> to vector<1x8x256xf32>
    tpu.vector_store %arg6[%c1_50, %c0_51, %c0_52], %168 {strides = array<i32>} : memref<4x8x256xf32, #tpu.memory_space<vmem>>, vector<1x8x256xf32>,
    %c2 = arith.constant 2 : index
    %c0_53 = arith.constant 0 : index
    %c0_54 = arith.constant 0 : index
    %169 = vector.load %arg1[%c2, %c0_53, %c0_54] : memref<4x8x256xf32, #tpu.memory_space<vmem>>, vector<1x8x256xf32>
    %170 = vector.shape_cast %169 : vector<1x8x256xf32> to vector<8x256xf32>
    %c17_i32_55 = arith.constant 17 : i32
    %171 = tpu.dynamic_rotate %170 by %c17_i32_55 dim 1 : vector<8x256xf32>, i32 -> vector<8x256xf32>
    %172 = vector.broadcast %15 : vector<1x256xf32> to vector<8x256xf32>
    %173 = arith.mulf %171, %172 : vector<8x256xf32>
    %c16_i32_56 = arith.constant 16 : i32
    %174 = tpu.dynamic_rotate %170 by %c16_i32_56 dim 1 : vector<8x256xf32>, i32 -> vector<8x256xf32>
    %175 = vector.broadcast %17 : vector<1x256xf32> to vector<8x256xf32>
    %176 = arith.mulf %174, %175 : vector<8x256xf32>
    %c15_i32_57 = arith.constant 15 : i32
    %177 = tpu.dynamic_rotate %170 by %c15_i32_57 dim 1 : vector<8x256xf32>, i32 -> vector<8x256xf32>
    %178 = vector.broadcast %20 : vector<1x256xf32> to vector<8x256xf32>
    %179 = arith.mulf %177, %178 : vector<8x256xf32>
    %c1_i32_58 = arith.constant 1 : i32
    %180 = tpu.dynamic_rotate %170 by %c1_i32_58 dim 1 : vector<8x256xf32>, i32 -> vector<8x256xf32>
    %181 = vector.broadcast %22 : vector<1x256xf32> to vector<8x256xf32>
    %182 = arith.mulf %180, %181 : vector<8x256xf32>
    %c255_i32_59 = arith.constant 255 : i32
    %183 = tpu.dynamic_rotate %170 by %c255_i32_59 dim 1 : vector<8x256xf32>, i32 -> vector<8x256xf32>
    %184 = vector.broadcast %24 : vector<1x256xf32> to vector<8x256xf32>
    %185 = arith.mulf %183, %184 : vector<8x256xf32>
    %c241_i32_60 = arith.constant 241 : i32
    %186 = tpu.dynamic_rotate %170 by %c241_i32_60 dim 1 : vector<8x256xf32>, i32 -> vector<8x256xf32>
    %187 = vector.broadcast %27 : vector<1x256xf32> to vector<8x256xf32>
    %188 = arith.mulf %186, %187 : vector<8x256xf32>
    %c240_i32_61 = arith.constant 240 : i32
    %189 = tpu.dynamic_rotate %170 by %c240_i32_61 dim 1 : vector<8x256xf32>, i32 -> vector<8x256xf32>
    %190 = vector.broadcast %29 : vector<1x256xf32> to vector<8x256xf32>
    %191 = arith.mulf %189, %190 : vector<8x256xf32>
    %c239_i32_62 = arith.constant 239 : i32
    %192 = tpu.dynamic_rotate %170 by %c239_i32_62 dim 1 : vector<8x256xf32>, i32 -> vector<8x256xf32>
    %193 = vector.broadcast %32 : vector<1x256xf32> to vector<8x256xf32>
    %194 = arith.mulf %192, %193 : vector<8x256xf32>
    %195 = tpu.concatenate %173, %176, %179, %182, %170, %185, %188, %191, %194 in 0 : vector<8x256xf32>, vector<8x256xf32>, vector<8x256xf32>, vector<8x256xf32>, vector<8x256xf32>, vector<8x256xf32>, vector<8x256xf32>, vector<8x256xf32>, vector<8x256xf32> -> vector<72x256xf32>
    %cst_63 = arith.constant dense<0.000000e+00> : vector<8x256xf32>
    %196 = tpu.matmul %33, %195, %cst_63 {dimension_numbers = #tpu.dot_dimension_numbers<[1], [0], [0], [1], [0, 0, 1, 1], [], []>} : vector<8x72xf32>, vector<72x256xf32>, vector<8x256xf32> -> vector<8x256xf32>
    %197 = vector.broadcast %34 : vector<8x1xf32> to vector<8x256xf32>
    %198 = arith.addf %196, %197 : vector<8x256xf32>
    %cst_64 = arith.constant 0.000000e+00 : f32
    %199 = vector.broadcast %cst_64 : f32 to vector<8x256xf32>
    %200 = arith.maximumf %198, %199 : vector<8x256xf32>
    %c17_i32_65 = arith.constant 17 : i32
    %201 = tpu.dynamic_rotate %200 by %c17_i32_65 dim 1 : vector<8x256xf32>, i32 -> vector<8x256xf32>
    %202 = vector.broadcast %15 : vector<1x256xf32> to vector<8x256xf32>
    %203 = arith.mulf %201, %202 : vector<8x256xf32>
    %c16_i32_66 = arith.constant 16 : i32
    %204 = tpu.dynamic_rotate %200 by %c16_i32_66 dim 1 : vector<8x256xf32>, i32 -> vector<8x256xf32>
    %205 = vector.broadcast %17 : vector<1x256xf32> to vector<8x256xf32>
    %206 = arith.mulf %204, %205 : vector<8x256xf32>
    %c15_i32_67 = arith.constant 15 : i32
    %207 = tpu.dynamic_rotate %200 by %c15_i32_67 dim 1 : vector<8x256xf32>, i32 -> vector<8x256xf32>
    %208 = vector.broadcast %20 : vector<1x256xf32> to vector<8x256xf32>
    %209 = arith.mulf %207, %208 : vector<8x256xf32>
    %c1_i32_68 = arith.constant 1 : i32
    %210 = tpu.dynamic_rotate %200 by %c1_i32_68 dim 1 : vector<8x256xf32>, i32 -> vector<8x256xf32>
    %211 = vector.broadcast %22 : vector<1x256xf32> to vector<8x256xf32>
    %212 = arith.mulf %210, %211 : vector<8x256xf32>
    %c255_i32_69 = arith.constant 255 : i32
    %213 = tpu.dynamic_rotate %200 by %c255_i32_69 dim 1 : vector<8x256xf32>, i32 -> vector<8x256xf32>
    %214 = vector.broadcast %24 : vector<1x256xf32> to vector<8x256xf32>
    %215 = arith.mulf %213, %214 : vector<8x256xf32>
    %c241_i32_70 = arith.constant 241 : i32
    %216 = tpu.dynamic_rotate %200 by %c241_i32_70 dim 1 : vector<8x256xf32>, i32 -> vector<8x256xf32>
    %217 = vector.broadcast %27 : vector<1x256xf32> to vector<8x256xf32>
    %218 = arith.mulf %216, %217 : vector<8x256xf32>
    %c240_i32_71 = arith.constant 240 : i32
    %219 = tpu.dynamic_rotate %200 by %c240_i32_71 dim 1 : vector<8x256xf32>, i32 -> vector<8x256xf32>
    %220 = vector.broadcast %29 : vector<1x256xf32> to vector<8x256xf32>
    %221 = arith.mulf %219, %220 : vector<8x256xf32>
    %c239_i32_72 = arith.constant 239 : i32
    %222 = tpu.dynamic_rotate %200 by %c239_i32_72 dim 1 : vector<8x256xf32>, i32 -> vector<8x256xf32>
    %223 = vector.broadcast %32 : vector<1x256xf32> to vector<8x256xf32>
    %224 = arith.mulf %222, %223 : vector<8x256xf32>
    %225 = tpu.concatenate %203, %206, %209, %212, %200, %215, %218, %221, %224 in 0 : vector<8x256xf32>, vector<8x256xf32>, vector<8x256xf32>, vector<8x256xf32>, vector<8x256xf32>, vector<8x256xf32>, vector<8x256xf32>, vector<8x256xf32>, vector<8x256xf32> -> vector<72x256xf32>
    %cst_73 = arith.constant dense<0.000000e+00> : vector<8x256xf32>
    %226 = tpu.matmul %35, %225, %cst_73 {dimension_numbers = #tpu.dot_dimension_numbers<[1], [0], [0], [1], [0, 0, 1, 1], [], []>} : vector<8x72xf32>, vector<72x256xf32>, vector<8x256xf32> -> vector<8x256xf32>
    %227 = vector.broadcast %36 : vector<8x1xf32> to vector<8x256xf32>
    %228 = arith.addf %226, %227 : vector<8x256xf32>
    %229 = arith.addf %228, %170 : vector<8x256xf32>
    %cst_74 = arith.constant 0.000000e+00 : f32
    %230 = vector.broadcast %cst_74 : f32 to vector<8x256xf32>
    %231 = arith.maximumf %229, %230 : vector<8x256xf32>
    %c2_75 = arith.constant 2 : index
    %c0_76 = arith.constant 0 : index
    %c0_77 = arith.constant 0 : index
    %232 = vector.load %arg6[%c2_75, %c0_76, %c0_77] : memref<4x8x256xf32, #tpu.memory_space<vmem>>, vector<1x8x256xf32>
    %233 = vector.shape_cast %232 : vector<1x8x256xf32> to vector<8x256xf32>
    %234 = vector.shape_cast %231 : vector<8x256xf32> to vector<1x8x256xf32>
    tpu.vector_store %arg6[%c2_75, %c0_76, %c0_77], %234 {strides = array<i32>} : memref<4x8x256xf32, #tpu.memory_space<vmem>>, vector<1x8x256xf32>,
    %c3 = arith.constant 3 : index
    %c0_78 = arith.constant 0 : index
    %c0_79 = arith.constant 0 : index
    %235 = vector.load %arg1[%c3, %c0_78, %c0_79] : memref<4x8x256xf32, #tpu.memory_space<vmem>>, vector<1x8x256xf32>
    %236 = vector.shape_cast %235 : vector<1x8x256xf32> to vector<8x256xf32>
    %c17_i32_80 = arith.constant 17 : i32
    %237 = tpu.dynamic_rotate %236 by %c17_i32_80 dim 1 : vector<8x256xf32>, i32 -> vector<8x256xf32>
    %238 = vector.broadcast %15 : vector<1x256xf32> to vector<8x256xf32>
    %239 = arith.mulf %237, %238 : vector<8x256xf32>
    %c16_i32_81 = arith.constant 16 : i32
    %240 = tpu.dynamic_rotate %236 by %c16_i32_81 dim 1 : vector<8x256xf32>, i32 -> vector<8x256xf32>
    %241 = vector.broadcast %17 : vector<1x256xf32> to vector<8x256xf32>
    %242 = arith.mulf %240, %241 : vector<8x256xf32>
    %c15_i32_82 = arith.constant 15 : i32
    %243 = tpu.dynamic_rotate %236 by %c15_i32_82 dim 1 : vector<8x256xf32>, i32 -> vector<8x256xf32>
    %244 = vector.broadcast %20 : vector<1x256xf32> to vector<8x256xf32>
    %245 = arith.mulf %243, %244 : vector<8x256xf32>
    %c1_i32_83 = arith.constant 1 : i32
    %246 = tpu.dynamic_rotate %236 by %c1_i32_83 dim 1 : vector<8x256xf32>, i32 -> vector<8x256xf32>
    %247 = vector.broadcast %22 : vector<1x256xf32> to vector<8x256xf32>
    %248 = arith.mulf %246, %247 : vector<8x256xf32>
    %c255_i32_84 = arith.constant 255 : i32
    %249 = tpu.dynamic_rotate %236 by %c255_i32_84 dim 1 : vector<8x256xf32>, i32 -> vector<8x256xf32>
    %250 = vector.broadcast %24 : vector<1x256xf32> to vector<8x256xf32>
    %251 = arith.mulf %249, %250 : vector<8x256xf32>
    %c241_i32_85 = arith.constant 241 : i32
    %252 = tpu.dynamic_rotate %236 by %c241_i32_85 dim 1 : vector<8x256xf32>, i32 -> vector<8x256xf32>
    %253 = vector.broadcast %27 : vector<1x256xf32> to vector<8x256xf32>
    %254 = arith.mulf %252, %253 : vector<8x256xf32>
    %c240_i32_86 = arith.constant 240 : i32
    %255 = tpu.dynamic_rotate %236 by %c240_i32_86 dim 1 : vector<8x256xf32>, i32 -> vector<8x256xf32>
    %256 = vector.broadcast %29 : vector<1x256xf32> to vector<8x256xf32>
    %257 = arith.mulf %255, %256 : vector<8x256xf32>
    %c239_i32_87 = arith.constant 239 : i32
    %258 = tpu.dynamic_rotate %236 by %c239_i32_87 dim 1 : vector<8x256xf32>, i32 -> vector<8x256xf32>
    %259 = vector.broadcast %32 : vector<1x256xf32> to vector<8x256xf32>
    %260 = arith.mulf %258, %259 : vector<8x256xf32>
    %261 = tpu.concatenate %239, %242, %245, %248, %236, %251, %254, %257, %260 in 0 : vector<8x256xf32>, vector<8x256xf32>, vector<8x256xf32>, vector<8x256xf32>, vector<8x256xf32>, vector<8x256xf32>, vector<8x256xf32>, vector<8x256xf32>, vector<8x256xf32> -> vector<72x256xf32>
    %cst_88 = arith.constant dense<0.000000e+00> : vector<8x256xf32>
    %262 = tpu.matmul %33, %261, %cst_88 {dimension_numbers = #tpu.dot_dimension_numbers<[1], [0], [0], [1], [0, 0, 1, 1], [], []>} : vector<8x72xf32>, vector<72x256xf32>, vector<8x256xf32> -> vector<8x256xf32>
    %263 = vector.broadcast %34 : vector<8x1xf32> to vector<8x256xf32>
    %264 = arith.addf %262, %263 : vector<8x256xf32>
    %cst_89 = arith.constant 0.000000e+00 : f32
    %265 = vector.broadcast %cst_89 : f32 to vector<8x256xf32>
    %266 = arith.maximumf %264, %265 : vector<8x256xf32>
    %c17_i32_90 = arith.constant 17 : i32
    %267 = tpu.dynamic_rotate %266 by %c17_i32_90 dim 1 : vector<8x256xf32>, i32 -> vector<8x256xf32>
    %268 = vector.broadcast %15 : vector<1x256xf32> to vector<8x256xf32>
    %269 = arith.mulf %267, %268 : vector<8x256xf32>
    %c16_i32_91 = arith.constant 16 : i32
    %270 = tpu.dynamic_rotate %266 by %c16_i32_91 dim 1 : vector<8x256xf32>, i32 -> vector<8x256xf32>
    %271 = vector.broadcast %17 : vector<1x256xf32> to vector<8x256xf32>
    %272 = arith.mulf %270, %271 : vector<8x256xf32>
    %c15_i32_92 = arith.constant 15 : i32
    %273 = tpu.dynamic_rotate %266 by %c15_i32_92 dim 1 : vector<8x256xf32>, i32 -> vector<8x256xf32>
    %274 = vector.broadcast %20 : vector<1x256xf32> to vector<8x256xf32>
    %275 = arith.mulf %273, %274 : vector<8x256xf32>
    %c1_i32_93 = arith.constant 1 : i32
    %276 = tpu.dynamic_rotate %266 by %c1_i32_93 dim 1 : vector<8x256xf32>, i32 -> vector<8x256xf32>
    %277 = vector.broadcast %22 : vector<1x256xf32> to vector<8x256xf32>
    %278 = arith.mulf %276, %277 : vector<8x256xf32>
    %c255_i32_94 = arith.constant 255 : i32
    %279 = tpu.dynamic_rotate %266 by %c255_i32_94 dim 1 : vector<8x256xf32>, i32 -> vector<8x256xf32>
    %280 = vector.broadcast %24 : vector<1x256xf32> to vector<8x256xf32>
    %281 = arith.mulf %279, %280 : vector<8x256xf32>
    %c241_i32_95 = arith.constant 241 : i32
    %282 = tpu.dynamic_rotate %266 by %c241_i32_95 dim 1 : vector<8x256xf32>, i32 -> vector<8x256xf32>
    %283 = vector.broadcast %27 : vector<1x256xf32> to vector<8x256xf32>
    %284 = arith.mulf %282, %283 : vector<8x256xf32>
    %c240_i32_96 = arith.constant 240 : i32
    %285 = tpu.dynamic_rotate %266 by %c240_i32_96 dim 1 : vector<8x256xf32>, i32 -> vector<8x256xf32>
    %286 = vector.broadcast %29 : vector<1x256xf32> to vector<8x256xf32>
    %287 = arith.mulf %285, %286 : vector<8x256xf32>
    %c239_i32_97 = arith.constant 239 : i32
    %288 = tpu.dynamic_rotate %266 by %c239_i32_97 dim 1 : vector<8x256xf32>, i32 -> vector<8x256xf32>
    %289 = vector.broadcast %32 : vector<1x256xf32> to vector<8x256xf32>
    %290 = arith.mulf %288, %289 : vector<8x256xf32>
    %291 = tpu.concatenate %269, %272, %275, %278, %266, %281, %284, %287, %290 in 0 : vector<8x256xf32>, vector<8x256xf32>, vector<8x256xf32>, vector<8x256xf32>, vector<8x256xf32>, vector<8x256xf32>, vector<8x256xf32>, vector<8x256xf32>, vector<8x256xf32> -> vector<72x256xf32>
    %cst_98 = arith.constant dense<0.000000e+00> : vector<8x256xf32>
    %292 = tpu.matmul %35, %291, %cst_98 {dimension_numbers = #tpu.dot_dimension_numbers<[1], [0], [0], [1], [0, 0, 1, 1], [], []>} : vector<8x72xf32>, vector<72x256xf32>, vector<8x256xf32> -> vector<8x256xf32>
    %293 = vector.broadcast %36 : vector<8x1xf32> to vector<8x256xf32>
    %294 = arith.addf %292, %293 : vector<8x256xf32>
    %295 = arith.addf %294, %236 : vector<8x256xf32>
    %cst_99 = arith.constant 0.000000e+00 : f32
    %296 = vector.broadcast %cst_99 : f32 to vector<8x256xf32>
    %297 = arith.maximumf %295, %296 : vector<8x256xf32>
    %c3_100 = arith.constant 3 : index
    %c0_101 = arith.constant 0 : index
    %c0_102 = arith.constant 0 : index
    %298 = vector.load %arg6[%c3_100, %c0_101, %c0_102] : memref<4x8x256xf32, #tpu.memory_space<vmem>>, vector<1x8x256xf32>
    %299 = vector.shape_cast %298 : vector<1x8x256xf32> to vector<8x256xf32>
    %300 = vector.shape_cast %297 : vector<8x256xf32> to vector<1x8x256xf32>
    tpu.vector_store %arg6[%c3_100, %c0_101, %c0_102], %300 {strides = array<i32>} : memref<4x8x256xf32, #tpu.memory_space<vmem>>, vector<1x8x256xf32>,
    return
  }
  func.func @transform_0(%arg0: i32) -> (i32, i32, i32) {
    %c0_i32 = arith.constant 0 : i32
    %c0_i32_0 = arith.constant 0 : i32
    %c0_i32_1 = arith.constant 0 : i32
    return %arg0, %c0_i32, %c0_i32_0 : i32, i32, i32
  }
  func.func @transform_1(%arg0: i32) -> (i32, i32) {
    %c0_i32 = arith.constant 0 : i32
    %c0_i32_0 = arith.constant 0 : i32
    %c0_i32_1 = arith.constant 0 : i32
    return %c0_i32, %c0_i32_0 : i32, i32
  }
  func.func @transform_2(%arg0: i32) -> (i32, i32) {
    %c0_i32 = arith.constant 0 : i32
    %c0_i32_0 = arith.constant 0 : i32
    %c0_i32_1 = arith.constant 0 : i32
    return %c0_i32, %c0_i32_0 : i32, i32
  }
  func.func @transform_3(%arg0: i32) -> (i32, i32) {
    %c0_i32 = arith.constant 0 : i32
    %c0_i32_0 = arith.constant 0 : i32
    %c0_i32_1 = arith.constant 0 : i32
    return %c0_i32, %c0_i32_0 : i32, i32
  }
  func.func @transform_4(%arg0: i32) -> (i32, i32) {
    %c0_i32 = arith.constant 0 : i32
    %c0_i32_0 = arith.constant 0 : i32
    %c0_i32_1 = arith.constant 0 : i32
    return %c0_i32, %c0_i32_0 : i32, i32
  }
  func.func @transform_5(%arg0: i32) -> (i32, i32, i32) {
    %c0_i32 = arith.constant 0 : i32
    %c0_i32_0 = arith.constant 0 : i32
    %c0_i32_1 = arith.constant 0 : i32
    return %arg0, %c0_i32, %c0_i32_0 : i32, i32, i32
  }
}

</mosaic_0001>

<bundles_post_ra>
// kernel: residual_block.1
= control target key start
LH: loop header
LB: loop body
LE: loop exit
PB: predicated region body
PF: predicated region fallthrough
CT: control target
= control target key end

     0   :  { %s1755_s18 = smov 0   ;;  %s2698_s0 = inlined_call_operand.vmem [shape: f32[8,8,256], index: 0, kind: input, shape index: {}]   ;;  %s2699_s1 = inlined_call_operand.vmem [shape: f32[8,72], index: 1, kind: input, shape index: {}]   ;;  %s2700_s2 = inlined_call_operand.vmem [shape: f32[8,1], index: 2, kind: input, shape index: {}]   ;;  %s2701_s3 = inlined_call_operand.vmem [shape: f32[8,72], index: 3, kind: input, shape index: {}]   ;;  %s2702_s4 = inlined_call_operand.vmem [shape: f32[8,1], index: 4, kind: input, shape index: {}]   ;;  %s2703_s5 = inlined_call_operand.vmem [shape: f32[8,8,256], index: 5, kind: output, shape index: {}]  }
   0x1 LB: > { %s1501_s19 = sadd.s32 4294967295, %s1713_s18   ;;  %p1505_p0 = scmp.ge.s32.totalorder %s1713_s18, 1  ;;  %s1713_s18 = sphi %s1755_s18, %s15_s18  }
   0x2   : > { %p189_p1 = scmp.lt.s32.totalorder %s1713_s18, 3 }
   0x4   : > { %p190_p2 = pnand %p1505_p0, %p189_p1 }
   0x5   : > { %s1506_s20 = sshll.u32 (!%p190_p2), %s1501_s19, 2  ;;  %v1715_v0 = vmov (!%p190_p2), 0.0   ;;  %s1716_s25 = smov (!%p190_p2), 16   ;;  %v233_v9 = vlaneseq (!%p190_p2)  ;;  %v1724_v12 = vmov (!%p190_p2), 0   ;;  %v289_v51 = vld [vmem:[%s2700_s2] sm:$0xff] (!%p190_p2) }
   0x6   : > { %193 = sbr.rel (%p190_p2) target bundleno = 853 (0x355), region = 40  ;;  %p220_p3 = scmp.lt.s32.totalorder (!%p190_p2), %s1506_s20, 7  ;;  %439 = vmatprep.mubr.f32.mxu0 (!%p190_p2), %v1715_v0  ;;  %584 = vmatprep.mubr.f32.mxu1 (!%p190_p2), %v1715_v0 }
   0x7   : > { %s1717_s26 = smov (!%p190_p2), 17   ;;  %s1718_s27 = smov (!%p190_p2), 15   ;;  %v1899_v10 = vand.u32 (!%p190_p2), 127, %v233_v9  ;;  %1698 = vset.pattern.permute.xlu0 (!%p190_p2), %v1724_v12 }
   0x8   : > { %s1719_s28 = smov (!%p190_p2), 1   ;;  %s1720_s29 = smov (!%p190_p2), 127  }
   0x9   : > { %s1721_s30 = smov (!%p190_p2), 113   ;;  %s1722_s6 = smov (!%p190_p2), 112   ;;  %v1906_v11 = vadd.s32 (!%p190_p2), 128, %v1899_v10  ;;  %v236_v15 = vshra.s32 (!%p190_p2), %v1899_v10, 4  ;;  %v238_v16 = vand.u32 (!%p190_p2), 15, %v1899_v10  ;;  %vm307_vm6 = vcmp.lt.s32.totalorder (!%p190_p2), %v1899_v10, 16 }
   0xa   : > { %s1723_s7 = smov (!%p190_p2), 111   ;;  %vm298_vm7 = vcmp.lt.s32.totalorder (!%p190_p2), %v1899_v10, 17  ;;  %vm316_vm12 = vcmp.lt.s32.totalorder (!%p190_p2), %v1899_v10, 15  ;;  %vm325_vm13 = vcmp.lt.s32.totalorder (!%p190_p2), %v1899_v10, 1  ;;  %vm334_vm14 = vcmp.lt.s32.totalorder (!%p190_p2), %v1899_v10, 127 }
   0xb   : > { %v237_v13 = vshra.s32 (!%p190_p2), %v1906_v11, 4  ;;  %v239_v14 = vand.u32 (!%p190_p2), 15, %v1906_v11  ;;  %vm1932_vm2 = vcmp.ge.s32.totalorder (!%p190_p2), %v236_v15, 1  ;;  %vm1936_vm3 = vcmp.ge.s32.totalorder (!%p190_p2), %v238_v16, 1 }
   0xc   : > { %vm248_vm5 = vmand (!%p190_p2), %vm1932_vm2, %vm1936_vm3  ;;  %vm1969_vm8 = vcmp.le.s32.totalorder (!%p190_p2), %v238_v16, 14  ;;  %v1980_v30 = vsel (!%p190_p2), %vm1932_vm2, 1.0, %v1715_v0  ;;  %v2015_v44 = vsel (!%p190_p2), %vm1936_vm3, 1.0, %v1715_v0  ;;  %vm2056_vm15 = vcmp.le.s32.totalorder (!%p190_p2), %v236_v15, 14 }
   0xd   : > { %s2721_s20 = smov (!%p220_p3, %s1506_s20), 7  ;;  %vm1922_vm0 = vcmp.ge.s32.totalorder %v237_v13, 1  ;;  %vm1926_vm1 = vcmp.ge.s32.totalorder %v239_v14, 1  ;;  %v1967_v25 = vsel %vm248_vm5, 1.0, %v1715_v0  ;;  %vm1973_vm9 = vcmp.le.s32.totalorder %v239_v14, 14  ;;  %vm258_vm10 = vmand %vm1932_vm2, %vm1969_vm8 }
   0xe   : > { %s1550_s21 = sshll.u32 %s2721_s20, 4  ;;  %vm249_vm4 = vmand %vm1922_vm0, %vm1926_vm1  ;;  %v1964_v24 = vsel %vm1922_vm0, 1.0, %v1715_v0  ;;  %v2008_v43 = vsel %vm258_vm10, 1.0, %v1715_v0  ;;  %v2030_v48 = vsel %vm1926_vm1, 1.0, %v1715_v0  ;;  %v2047_v58 = vsel %vm1969_vm8, 1.0, %v1715_v0 }
   0xf   : > { %s1773_s24 = scalar_lea.vmem %s2698_s0, %s1550_s21  ;;  %v1959_v23 = vsel %vm249_vm4, 1.0, %v1715_v0  ;;  %vm259_vm11 = vmand %vm1922_vm0, %vm1973_vm9  ;;  %v2052_v59 = vsel %vm1973_vm9, 1.0, %v1715_v0  ;;  %vm2062_vm0 = vcmp.le.s32.totalorder %v237_v13, 14  ;;  %vm343_vm5 = vcmp.lt.s32.totalorder %v1899_v10, 113  ;;  %s2678_s19 = scalar_lea.vmem %s2703_s5, %s1550_s21 }
  0x10   : > { %v1776_v1 = vld [vmem:[%s1773_s24] sm:$0xff]  ;;  %v1783_v2 = vld [vmem:[%s1773_s24 + $0x8] sm:$0xff]  ;;  %v1814_v3 = vld [vmem:[%s1773_s24 + $0x18] sm:$0xff]  ;;  %v2019_v45 = vsel %vm259_vm11, 1.0, %v1715_v0  ;;  %vm361_vm10 = vcmp.lt.s32.totalorder %v1899_v10, 111 }
  0x11   : > { %303 = vrot.lane.b32.xlu1 %v1776_v1, %s1716_s25  ;;  %294 = vrot.lane.b32.xlu0 %v1776_v1, %s1717_s26  ;;  %v1817_v4 = vld [vmem:[%s1773_s24 + $0x10] sm:$0xff]  ;;  %v1852_v5 = vld [vmem:[%s1773_s24 + $0x28] sm:$0xff]  ;;  %vm272_vm2 = vmand %vm2056_vm15, %vm1936_vm3  ;;  %vm352_vm3 = vcmp.lt.s32.totalorder %v1899_v10, 112 }
  0x12   : > { %v1855_v6 = vld [vmem:[%s1773_s24 + $0x20] sm:$0xff]  ;;  %v1890_v7 = vld [vmem:[%s1773_s24 + $0x38] sm:$0xff]  ;;  %v1893_v8 = vld [vmem:[%s1773_s24 + $0x30] sm:$0xff] }
  0x13   : > { %vm273_vm4 = vmand %vm2062_vm0, %vm1926_vm1 }
  0x14   : > { %v2087_v20 = vsel %vm273_vm4, 1.0, %v1715_v0  ;;  %vm283_vm1 = vmand %vm2062_vm0, %vm1973_vm9 }
  0x15   : > { %305 = vrot.lane.b32.xlu1 %v1783_v2, %s1716_s25  ;;  %296 = vrot.lane.b32.xlu0 %v1783_v2, %s1717_s26  ;;  %vm282_vm11 = vmand %vm2056_vm15, %vm1969_vm8  ;;  %vm371_vm8 = vcmask 588800  }
  0x16   : > { %v2125_v28 = vsel %vm282_vm11, 1.0, %v1715_v0 }
  0x19   : > { %314 = vrot.lane.b32.xlu1 %v1783_v2, %s1718_s27  ;;  %312 = vrot.lane.b32.xlu0 %v1776_v1, %s1718_s27 }
  0x1d   : > { %323 = vrot.lane.b32.xlu1 %v1783_v2, %s1719_s28  ;;  %321 = vrot.lane.b32.xlu0 %v1776_v1, %s1719_s28 }
  0x21   : > { %332 = vrot.lane.b32.xlu1 %v1783_v2, %s1720_s29  ;;  %330 = vrot.lane.b32.xlu0 %v1776_v1, %s1720_s29 }
  0x25   : > { %341 = vrot.lane.b32.xlu1 %v1783_v2, %s1721_s30  ;;  %339 = vrot.lane.b32.xlu0 %v1776_v1, %s1721_s30 }
  0x29   : > { %350 = vrot.lane.b32.xlu1 %v1783_v2, %s1722_s6  ;;  %348 = vrot.lane.b32.xlu0 %v1776_v1, %s1722_s6 }
  0x2d   : > { %359 = vrot.lane.b32.xlu1 %v1783_v2, %s1723_s7  ;;  %357 = vrot.lane.b32.xlu0 %v1776_v1, %s1723_s7 }
  0x31   : > { %602 = vrot.lane.b32.xlu1 %v1814_v3, %s1717_s26  ;;  %600 = vrot.lane.b32.xlu0 %v1817_v4, %s1717_s26 }
  0x35   : > { %610 = vrot.lane.b32.xlu1 %v1814_v3, %s1716_s25  ;;  %608 = vrot.lane.b32.xlu0 %v1817_v4, %s1716_s25 }
  0x39   : > { %618 = vrot.lane.b32.xlu1 %v1814_v3, %s1718_s27  ;;  %616 = vrot.lane.b32.xlu0 %v1817_v4, %s1718_s27 }
  0x3d   : > { %626 = vrot.lane.b32.xlu1 %v1814_v3, %s1719_s28  ;;  %624 = vrot.lane.b32.xlu0 %v1817_v4, %s1719_s28 }
  0x41   : > { %634 = vrot.lane.b32.xlu1 %v1814_v3, %s1720_s29  ;;  %632 = vrot.lane.b32.xlu0 %v1817_v4, %s1720_s29 }
  0x45   : > { %642 = vrot.lane.b32.xlu1 %v1814_v3, %s1721_s30  ;;  %640 = vrot.lane.b32.xlu0 %v1817_v4, %s1721_s30 }
  0x49   : > { %650 = vrot.lane.b32.xlu1 %v1814_v3, %s1722_s6  ;;  %648 = vrot.lane.b32.xlu0 %v1817_v4, %s1722_s6 }
  0x4d   : > { %658 = vrot.lane.b32.xlu1 %v1814_v3, %s1723_s7  ;;  %656 = vrot.lane.b32.xlu0 %v1817_v4, %s1723_s7 }
  0x51   : > { %884 = vrot.lane.b32.xlu1 %v1852_v5, %s1717_s26  ;;  %882 = vrot.lane.b32.xlu0 %v1855_v6, %s1717_s26 }
  0x55   : > { %892 = vrot.lane.b32.xlu1 %v1852_v5, %s1716_s25  ;;  %890 = vrot.lane.b32.xlu0 %v1855_v6, %s1716_s25 }
  0x59   : > { %900 = vrot.lane.b32.xlu1 %v1852_v5, %s1718_s27  ;;  %898 = vrot.lane.b32.xlu0 %v1855_v6, %s1718_s27 }
  0x5d   : > { %908 = vrot.lane.b32.xlu1 %v1852_v5, %s1719_s28  ;;  %906 = vrot.lane.b32.xlu0 %v1855_v6, %s1719_s28 }
  0x61   : > { %916 = vrot.lane.b32.xlu1 %v1852_v5, %s1720_s29  ;;  %914 = vrot.lane.b32.xlu0 %v1855_v6, %s1720_s29 }
  0x65   : > { %924 = vrot.lane.b32.xlu1 %v1852_v5, %s1721_s30  ;;  %922 = vrot.lane.b32.xlu0 %v1855_v6, %s1721_s30 }
  0x69   : > { %932 = vrot.lane.b32.xlu1 %v1852_v5, %s1722_s6  ;;  %930 = vrot.lane.b32.xlu0 %v1855_v6, %s1722_s6 }
  0x6d   : > { %940 = vrot.lane.b32.xlu1 %v1852_v5, %s1723_s7  ;;  %938 = vrot.lane.b32.xlu0 %v1855_v6, %s1723_s7 }
  0x71   : > { %1166 = vrot.lane.b32.xlu1 %v1890_v7, %s1717_s26  ;;  %1164 = vrot.lane.b32.xlu0 %v1893_v8, %s1717_s26 }
  0x75   : > { %1174 = vrot.lane.b32.xlu1 %v1890_v7, %s1716_s25  ;;  %1172 = vrot.lane.b32.xlu0 %v1893_v8, %s1716_s25 }
  0x79   : > { %1182 = vrot.lane.b32.xlu1 %v1890_v7, %s1718_s27  ;;  %1180 = vrot.lane.b32.xlu0 %v1893_v8, %s1718_s27 }
  0x7d   : > { %1190 = vrot.lane.b32.xlu1 %v1890_v7, %s1719_s28  ;;  %1188 = vrot.lane.b32.xlu0 %v1893_v8, %s1719_s28 }
  0x81   : > { %1198 = vrot.lane.b32.xlu1 %v1890_v7, %s1720_s29  ;;  %1196 = vrot.lane.b32.xlu0 %v1893_v8, %s1720_s29 }
  0x83   : > { %v304_v21 = vpop.permute.xlu1 %303  ;;  %v295_v22 = vpop.permute.xlu0 %294 }
  0x85   : > { %1206 = vrot.lane.b32.xlu1 %v1890_v7, %s1721_s30  ;;  %1204 = vrot.lane.b32.xlu0 %v1893_v8, %s1721_s30 }
  0x87   : > { %v306_v26 = vpop.permute.xlu1 %305  ;;  %v297_v27 = vpop.permute.xlu0 %296 }
  0x88   : > { %v309_v31 = vsel %vm307_vm6, %v306_v26, %v304_v21  ;;  %v300_v32 = vsel %vm298_vm7, %v297_v27, %v295_v22  ;;  %v299_v33 = vsel %vm298_vm7, %v295_v22, %v297_v27  ;;  %v308_v34 = vsel %vm307_vm6, %v304_v21, %v306_v26 }
  0x89   : > { %1214 = vrot.lane.b32.xlu1 %v1890_v7, %s1722_s6  ;;  %1212 = vrot.lane.b32.xlu0 %v1893_v8, %s1722_s6  ;;  %v302_v35 = vmul.f32 %v1959_v23, %v299_v33  ;;  %v311_v36 = vmul.f32 %v1964_v24, %v308_v34  ;;  %v301_v37 = vmul.f32 %v1967_v25, %v300_v32  ;;  %v2084_v22 = vsel %vm272_vm2, 1.0, %v1715_v0 }
  0x8a   : > { %v310_v38 = vmul.f32 %v1980_v30, %v309_v31 }
  0x8b   : > { %v315_v39 = vpop.permute.xlu1 %314  ;;  %v313_v40 = vpop.permute.xlu0 %312  ;;  %v1552_v41 = vpack.c.bf16 %v311_v36, %v302_v35 }
  0x8c   : > { %v1554_v42 = vpack.c.bf16 %v310_v38, %v301_v37  ;;  %v317_v46 = vsel %vm316_vm12, %v313_v40, %v315_v39  ;;  %v318_v47 = vsel %vm316_vm12, %v315_v39, %v313_v40  ;;  %v2122_v37 = vsel %vm283_vm1, 1.0, %v1715_v0 }
  0x8d   : > { %1553 = vmatprep.subr.bf16.mxu0 %v1552_v41  ;;  %1222 = vrot.lane.b32.xlu1 %v1890_v7, %s1723_s7  ;;  %v319_v54 = vmul.f32 %v2008_v43, %v318_v47  ;;  %v320_v55 = vmul.f32 %v2019_v45, %v317_v46 }
  0x8e   : > { %1555 = vmatpush1.bf16.msra.mxu0 %v1554_v42  ;;  %1220 = vrot.lane.b32.xlu0 %v1893_v8, %s1723_s7 }
  0x8f   : > { %v324_v49 = vpop.permute.xlu1 %323  ;;  %v322_v50 = vpop.permute.xlu0 %321 }
  0x90   : > { %v326_v52 = vsel %vm325_vm13, %v322_v50, %v324_v49  ;;  %v327_v53 = vsel %vm325_vm13, %v324_v49, %v322_v50 }
  0x91   : > { %v328_v56 = vmul.f32 %v2015_v44, %v327_v53  ;;  %v329_v57 = vmul.f32 %v2030_v48, %v326_v52 }
  0x92   : > { %368 = vperm.xlu0 %1698, %v289_v51  }
  0x93   : > { %v333_v61 = vpop.permute.xlu1 %332  ;;  %v331_v62 = vpop.permute.xlu0 %330  ;;  %v1556_v63 = vpack.c.bf16 %v329_v57, %v320_v55  ;;  %v1558_v9 = vpack.c.bf16 %v328_v56, %v319_v54  ;;  %v2140_v54 = vld [vmem:[%s2699_s1] sm:$0xff] }
  0x94   : > { %v335_v14 = vsel %vm334_vm14, %v331_v62, %v333_v61  ;;  %v336_v15 = vsel %vm334_vm14, %v333_v61, %v331_v62 }
  0x95   : > { %v337_v16 = vmul.f32 %v2047_v58, %v335_v14  ;;  %v338_v17 = vmul.f32 %v2052_v59, %v336_v15  ;;  %1557 = vmatprep.subr.bf16.mxu0 %v1556_v63 }
  0x96   : > { %1559 = vmatpush1.bf16.msra.mxu0 %v1558_v9 }
  0x97   : > { %v342_v11 = vpop.permute.xlu1 %341  ;;  %v340_v13 = vpop.permute.xlu0 %339  ;;  %v1560_v19 = vpack.c.bf16 %v338_v17, %v1783_v2  ;;  %v1562_v21 = vpack.c.bf16 %v337_v16, %v1776_v1  ;;  %v2097_v1 = vsel %vm2056_vm15, 1.0, %v1715_v0  ;;  %v2102_v2 = vsel %vm2062_vm0, 1.0, %v1715_v0 }
  0x98   : > { %v344_v18 = vsel %vm343_vm5, %v340_v13, %v342_v11  ;;  %v345_v26 = vsel %vm343_vm5, %v342_v11, %v340_v13 }
  0x99   : > { %1561 = vmatprep.subr.bf16.mxu0 %v1560_v19  ;;  %v346_v34 = vmul.f32 %v2084_v22, %v344_v18  ;;  %v347_v29 = vmul.f32 %v2087_v20, %v345_v26 }
  0x9a   : > { %1563 = vmatpush1.bf16.msra.mxu0 %v1562_v21 }
  0x9b   : > { %v351_v27 = vpop.permute.xlu1 %350  ;;  %v349_v31 = vpop.permute.xlu0 %348 }
  0x9c   : > { %v353_v32 = vsel %vm352_vm3, %v349_v31, %v351_v27  ;;  %v354_v33 = vsel %vm352_vm3, %v351_v27, %v349_v31 }
  0x9d   : > { %v355_v35 = vmul.f32 %v2097_v1, %v353_v32  ;;  %v356_v36 = vmul.f32 %v2102_v2, %v354_v33 }
  0x9f   : > { %v360_v38 = vpop.permute.xlu1 %359  ;;  %v358_v39 = vpop.permute.xlu0 %357  ;;  %v1564_v40 = vpack.c.bf16 %v356_v36, %v347_v29  ;;  %v1566_v41 = vpack.c.bf16 %v355_v35, %v346_v34 }
  0xa0   : > { %v362_v42 = vsel %vm361_vm10, %v358_v39, %v360_v38  ;;  %v363_v46 = vsel %vm361_vm10, %v360_v38, %v358_v39 }
  0xa1   : > { %1565 = vmatprep.subr.bf16.mxu0 %v1564_v40  ;;  %v365_v47 = vmul.f32 %v2122_v37, %v363_v46  ;;  %v364_v49 = vmul.f32 %v2125_v28, %v362_v42 }
  0xa2   : > { %1567 = vmatpush1.bf16.msra.mxu0 %v1566_v41 }
  0xa3   : > { %v603_v50 = vpop.permute.xlu1 %602  ;;  %v601_v51 = vpop.permute.xlu0 %600  ;;  %391 = vmatprep.subr.mxu0 %v365_v47 }
  0xa4   : > { %v604_v52 = vsel %vm298_vm7, %v601_v51, %v603_v50  ;;  %v605_v53 = vsel %vm298_vm7, %v603_v50, %v601_v51 }
  0xa5   : > { %v606_v55 = vmul.f32 %v1967_v25, %v605_v53  ;;  %v607_v56 = vmul.f32 %v1959_v23, %v604_v52 }
  0xa6   : > { %392 = vmatpush1.msra.mxu0 %v364_v49 }
  0xa7   : > { %v611_v57 = vpop.permute.xlu1 %610  ;;  %1528 = vmatmul.mubr.msk.f32.vlgmr.msra.gmra.mrb[0].mxu0 %vm371_vm8, %v2140_v54  ;;  %v609_v60 = vpop.permute.xlu0 %608 }
  0xa8   : > { %v612_v61 = vsel %vm307_vm6, %v609_v60, %v611_v57  ;;  %v613_v62 = vsel %vm307_vm6, %v611_v57, %v609_v60  ;;  %728 = vmatprep.mubr.f32.mxu0 %v1715_v0 }
  0xa9   : > { %v614_v63 = vmul.f32 %v1980_v30, %v613_v62  ;;  %v615_v9 = vmul.f32 %v1964_v24, %v612_v61 }
  0xab   : > { %v1586_v12 = vpack.c.bf16 %v614_v63, %v606_v55  ;;  %v619_v14 = vpop.permute.xlu1 %618  ;;  %v617_v15 = vpop.permute.xlu0 %616  ;;  %v1584_v16 = vpack.c.bf16 %v615_v9, %v607_v56 }
  0xac   : > { %v620_v17 = vsel %vm316_vm12, %v617_v15, %v619_v14  ;;  %v621_v11 = vsel %vm316_vm12, %v619_v14, %v617_v15 }
  0xad   : > { %1585 = vmatprep.subr.bf16.mxu0 %v1584_v16  ;;  %v622_v13 = vmul.f32 %v2008_v43, %v621_v11  ;;  %v623_v19 = vmul.f32 %v2019_v45, %v620_v17 }
  0xae   : > { %1587 = vmatpush1.bf16.msra.mxu0 %v1586_v12 }
  0xaf   : > { %v627_v21 = vpop.permute.xlu1 %626  ;;  %v625_v18 = vpop.permute.xlu0 %624 }
  0xb0   : > { %v628_v26 = vsel %vm325_vm13, %v625_v18, %v627_v21  ;;  %v629_v27 = vsel %vm325_vm13, %v627_v21, %v625_v18 }
  0xb1   : > { %v630_v31 = vmul.f32 %v2015_v44, %v629_v27  ;;  %v631_v32 = vmul.f32 %v2030_v48, %v628_v26 }
  0xb3   : > { %v1590_v33 = vpack.c.bf16 %v630_v31, %v622_v13  ;;  %v635_v34 = vpop.permute.xlu1 %634  ;;  %v633_v29 = vpop.permute.xlu0 %632  ;;  %v1588_v35 = vpack.c.bf16 %v631_v32, %v623_v19 }
  0xb4   : > { %v636_v36 = vsel %vm334_vm14, %v633_v29, %v635_v34  ;;  %v637_v38 = vsel %vm334_vm14, %v635_v34, %v633_v29 }
  0xb5   : > { %v638_v39 = vmul.f32 %v2047_v58, %v636_v36  ;;  %v639_v40 = vmul.f32 %v2052_v59, %v637_v38  ;;  %1589 = vmatprep.subr.bf16.mxu0 %v1588_v35 }
  0xb6   : > { %1591 = vmatpush1.bf16.msra.mxu0 %v1590_v33 }
  0xb7   : > { %v1594_v41 = vpack.c.bf16 %v638_v39, %v1817_v4  ;;  %v643_v42 = vpop.permute.xlu1 %642  ;;  %v641_v46 = vpop.permute.xlu0 %640  ;;  %v1592_v47 = vpack.c.bf16 %v639_v40, %v1814_v3 }
  0xb8   : > { %v644_v49 = vsel %vm343_vm5, %v641_v46, %v643_v42  ;;  %v645_v50 = vsel %vm343_vm5, %v643_v42, %v641_v46 }
  0xb9   : > { %1593 = vmatprep.subr.bf16.mxu0 %v1592_v47  ;;  %v646_v51 = vmul.f32 %v2084_v22, %v644_v49  ;;  %v647_v52 = vmul.f32 %v2087_v20, %v645_v50 }
  0xba   : > { %1595 = vmatpush1.bf16.msra.mxu0 %v1594_v41 }
  0xbb   : > { %v651_v53 = vpop.permute.xlu1 %650  ;;  %v649_v55 = vpop.permute.xlu0 %648 }
  0xbc   : > { %v652_v4 = vsel %vm352_vm3, %v649_v55, %v651_v53  ;;  %v653_v3 = vsel %vm352_vm3, %v651_v53, %v649_v55 }
  0xbd   : > { %v654_v56 = vmul.f32 %v2097_v1, %v652_v4  ;;  %v655_v57 = vmul.f32 %v2102_v2, %v653_v3 }
  0xbf   : > { %v1598_v60 = vpack.c.bf16 %v654_v56, %v646_v51  ;;  %v659_v61 = vpop.permute.xlu1 %658  ;;  %v657_v62 = vpop.permute.xlu0 %656  ;;  %v1596_v63 = vpack.c.bf16 %v655_v57, %v647_v52 }
  0xc0   : > { %v660_v9 = vsel %vm361_vm10, %v657_v62, %v659_v61  ;;  %v661_v12 = vsel %vm361_vm10, %v659_v61, %v657_v62 }
  0xc1   : > { %1597 = vmatprep.subr.bf16.mxu0 %v1596_v63  ;;  %v663_v14 = vmul.f32 %v2122_v37, %v661_v12  ;;  %v662_v15 = vmul.f32 %v2125_v28, %v660_v9 }
  0xc2   : > { %1599 = vmatpush1.bf16.msra.mxu0 %v1598_v60 }
  0xc3   : > { %v885_v16 = vpop.permute.xlu1 %884  ;;  %v883_v17 = vpop.permute.xlu0 %882  ;;  %680 = vmatprep.subr.mxu0 %v663_v14 }
  0xc4   : > { %v886_v11 = vsel %vm298_vm7, %v883_v17, %v885_v16  ;;  %v887_v13 = vsel %vm298_vm7, %v885_v16, %v883_v17 }
  0xc5   : > { %v888_v19 = vmul.f32 %v1967_v25, %v887_v13  ;;  %v889_v21 = vmul.f32 %v1959_v23, %v886_v11 }
  0xc6   : > { %681 = vmatpush1.msra.mxu0 %v662_v15 }
  0xc7   : > { %v893_v18 = vpop.permute.xlu1 %892  ;;  %1532 = vmatmul.mubr.msk.f32.vlgmr.msra.gmra.mrb[2].mxu0 %vm371_vm8, %v2140_v54  ;;  %v891_v26 = vpop.permute.xlu0 %890 }
  0xc8   : > { %v894_v27 = vsel %vm307_vm6, %v891_v26, %v893_v18  ;;  %v895_v31 = vsel %vm307_vm6, %v893_v18, %v891_v26  ;;  %1010 = vmatprep.mubr.f32.mxu0 %v1715_v0 }
  0xc9   : > { %v896_v32 = vmul.f32 %v1980_v30, %v895_v31  ;;  %v897_v33 = vmul.f32 %v1964_v24, %v894_v27 }
  0xcb   : > { %v1618_v34 = vpack.c.bf16 %v896_v32, %v888_v19  ;;  %v901_v29 = vpop.permute.xlu1 %900  ;;  %v899_v35 = vpop.permute.xlu0 %898  ;;  %v1616_v36 = vpack.c.bf16 %v897_v33, %v889_v21 }
  0xcc   : > { %v902_v38 = vsel %vm316_vm12, %v899_v35, %v901_v29  ;;  %v903_v39 = vsel %vm316_vm12, %v901_v29, %v899_v35 }
  0xcd   : > { %1617 = vmatprep.subr.bf16.mxu0 %v1616_v36  ;;  %v904_v40 = vmul.f32 %v2008_v43, %v903_v39  ;;  %v905_v41 = vmul.f32 %v2019_v45, %v902_v38 }
  0xce   : > { %1619 = vmatpush1.bf16.msra.mxu0 %v1618_v34 }
  0xcf   : > { %v909_v42 = vpop.permute.xlu1 %908  ;;  %v907_v46 = vpop.permute.xlu0 %906 }
  0xd0   : > { %v910_v47 = vsel %vm325_vm13, %v907_v46, %v909_v42  ;;  %v911_v49 = vsel %vm325_vm13, %v909_v42, %v907_v46 }
  0xd1   : > { %v912_v50 = vmul.f32 %v2015_v44, %v911_v49  ;;  %v913_v51 = vmul.f32 %v2030_v48, %v910_v47 }
  0xd3   : > { %v1622_v52 = vpack.c.bf16 %v912_v50, %v904_v40  ;;  %v917_v53 = vpop.permute.xlu1 %916  ;;  %v915_v55 = vpop.permute.xlu0 %914  ;;  %v1620_v4 = vpack.c.bf16 %v913_v51, %v905_v41 }
  0xd4   : > { %v918_v3 = vsel %vm334_vm14, %v915_v55, %v917_v53  ;;  %v919_v56 = vsel %vm334_vm14, %v917_v53, %v915_v55 }
  0xd5   : > { %v920_v57 = vmul.f32 %v2047_v58, %v918_v3  ;;  %v921_v60 = vmul.f32 %v2052_v59, %v919_v56  ;;  %1621 = vmatprep.subr.bf16.mxu0 %v1620_v4 }
  0xd6   : > { %1623 = vmatpush1.bf16.msra.mxu0 %v1622_v52 }
  0xd7   : > { %v1626_v61 = vpack.c.bf16 %v920_v57, %v1855_v6  ;;  %v925_v62 = vpop.permute.xlu1 %924  ;;  %v923_v63 = vpop.permute.xlu0 %922  ;;  %v1624_v9 = vpack.c.bf16 %v921_v60, %v1852_v5 }
  0xd8   : > { %v926_v12 = vsel %vm343_vm5, %v923_v63, %v925_v62  ;;  %v927_v14 = vsel %vm343_vm5, %v925_v62, %v923_v63 }
  0xd9   : > { %1625 = vmatprep.subr.bf16.mxu0 %v1624_v9  ;;  %v928_v15 = vmul.f32 %v2084_v22, %v926_v12  ;;  %v929_v16 = vmul.f32 %v2087_v20, %v927_v14 }
  0xda   : > { %1627 = vmatpush1.bf16.msra.mxu0 %v1626_v61 }
  0xdb   : > { %v933_v17 = vpop.permute.xlu1 %932  ;;  %v931_v11 = vpop.permute.xlu0 %930 }
  0xdc   : > { %v934_v6 = vsel %vm352_vm3, %v931_v11, %v933_v17  ;;  %v935_v5 = vsel %vm352_vm3, %v933_v17, %v931_v11 }
  0xdd   : > { %v936_v13 = vmul.f32 %v2097_v1, %v934_v6  ;;  %v937_v19 = vmul.f32 %v2102_v2, %v935_v5 }
  0xdf   : > { %v1630_v21 = vpack.c.bf16 %v936_v13, %v928_v15  ;;  %v941_v18 = vpop.permute.xlu1 %940  ;;  %v939_v26 = vpop.permute.xlu0 %938  ;;  %v1628_v27 = vpack.c.bf16 %v937_v19, %v929_v16 }
  0xe0   : > { %v942_v31 = vsel %vm361_vm10, %v939_v26, %v941_v18  ;;  %v943_v32 = vsel %vm361_vm10, %v941_v18, %v939_v26 }
  0xe1   : > { %v945_v33 = vmul.f32 %v2122_v37, %v943_v32  ;;  %1629 = vmatprep.subr.bf16.mxu0 %v1628_v27  ;;  %v944_v34 = vmul.f32 %v2125_v28, %v942_v31 }
  0xe2   : > { %1631 = vmatpush1.bf16.msra.mxu0 %v1630_v21 }
  0xe3   : > { %v1167_v29 = vpop.permute.xlu1 %1166  ;;  %v1165_v35 = vpop.permute.xlu0 %1164  ;;  %962 = vmatprep.subr.mxu0 %v945_v33 }
  0xe4   : > { %v1168_v36 = vsel %vm298_vm7, %v1165_v35, %v1167_v29  ;;  %v1169_v38 = vsel %vm298_vm7, %v1167_v29, %v1165_v35 }
  0xe5   : > { %v1170_v39 = vmul.f32 %v1967_v25, %v1169_v38  ;;  %v1171_v40 = vmul.f32 %v1959_v23, %v1168_v36 }
  0xe6   : > { %963 = vmatpush1.msra.mxu0 %v944_v34 }
  0xe7   : > { %v1175_v41 = vpop.permute.xlu1 %1174  ;;  %1538 = vmatmul.mubr.msk.f32.vlgmr.msra.gmra.mrb[4].mxu0 %vm371_vm8, %v2140_v54  ;;  %v1173_v42 = vpop.permute.xlu0 %1172 }
  0xe8   : > { %v1176_v46 = vsel %vm307_vm6, %v1173_v42, %v1175_v41  ;;  %v1177_v47 = vsel %vm307_vm6, %v1175_v41, %v1173_v42  ;;  %1292 = vmatprep.mubr.f32.mxu0 %v1715_v0 }
  0xe9   : > { %v1178_v49 = vmul.f32 %v1980_v30, %v1177_v47  ;;  %v1179_v50 = vmul.f32 %v1964_v24, %v1176_v46 }
  0xeb   : > { %v1650_v51 = vpack.c.bf16 %v1178_v49, %v1170_v39  ;;  %v1183_v52 = vpop.permute.xlu1 %1182  ;;  %v1181_v53 = vpop.permute.xlu0 %1180  ;;  %v1648_v55 = vpack.c.bf16 %v1179_v50, %v1171_v40 }
  0xec   : > { %v1184_v4 = vsel %vm316_vm12, %v1181_v53, %v1183_v52  ;;  %v1185_v3 = vsel %vm316_vm12, %v1183_v52, %v1181_v53 }
  0xed   : > { %1649 = vmatprep.subr.bf16.mxu0 %v1648_v55  ;;  %v1186_v56 = vmul.f32 %v2008_v43, %v1185_v3  ;;  %v1187_v57 = vmul.f32 %v2019_v45, %v1184_v4 }
  0xee   : > { %1651 = vmatpush1.bf16.msra.mxu0 %v1650_v51 }
  0xef   : > { %v1191_v60 = vpop.permute.xlu1 %1190  ;;  %v1189_v61 = vpop.permute.xlu0 %1188 }
  0xf0   : > { %v1192_v62 = vsel %vm325_vm13, %v1189_v61, %v1191_v60  ;;  %v1193_v63 = vsel %vm325_vm13, %v1191_v60, %v1189_v61 }
  0xf1   : > { %v1194_v9 = vmul.f32 %v2015_v44, %v1193_v63  ;;  %v1195_v12 = vmul.f32 %v2030_v48, %v1192_v62 }
  0xf3   : > { %v1654_v14 = vpack.c.bf16 %v1194_v9, %v1186_v56  ;;  %v1199_v15 = vpop.permute.xlu1 %1198  ;;  %v1197_v16 = vpop.permute.xlu0 %1196  ;;  %v1652_v17 = vpack.c.bf16 %v1195_v12, %v1187_v57 }
  0xf4   : > { %v1200_v11 = vsel %vm334_vm14, %v1197_v16, %v1199_v15  ;;  %v1201_v6 = vsel %vm334_vm14, %v1199_v15, %v1197_v16 }
  0xf5   : > { %v1202_v5 = vmul.f32 %v2047_v58, %v1200_v11  ;;  %v1203_v13 = vmul.f32 %v2052_v59, %v1201_v6  ;;  %1653 = vmatprep.subr.bf16.mxu0 %v1652_v17 }
  0xf6   : > { %1655 = vmatpush1.bf16.msra.mxu0 %v1654_v14 }
  0xf7   : > { %v1658_v19 = vpack.c.bf16 %v1202_v5, %v1893_v8  ;;  %v1207_v21 = vpop.permute.xlu1 %1206  ;;  %v1205_v18 = vpop.permute.xlu0 %1204  ;;  %v1656_v26 = vpack.c.bf16 %v1203_v13, %v1890_v7 }
  0xf8   : > { %v1208_v27 = vsel %vm343_vm5, %v1205_v18, %v1207_v21  ;;  %v1209_v31 = vsel %vm343_vm5, %v1207_v21, %v1205_v18 }
  0xf9   : > { %1657 = vmatprep.subr.bf16.mxu0 %v1656_v26  ;;  %v1210_v32 = vmul.f32 %v2084_v22, %v1208_v27  ;;  %v1211_v33 = vmul.f32 %v2087_v20, %v1209_v31 }
  0xfa   : > { %1659 = vmatpush1.bf16.msra.mxu0 %v1658_v19 }
  0xfb   : > { %v1215_v34 = vpop.permute.xlu1 %1214  ;;  %v1213_v29 = vpop.permute.xlu0 %1212 }
  0xfc   : > { %v1216_v8 = vsel %vm352_vm3, %v1213_v29, %v1215_v34  ;;  %v1217_v7 = vsel %vm352_vm3, %v1215_v34, %v1213_v29 }
  0xfd   : > { %v1218_v35 = vmul.f32 %v2097_v1, %v1216_v8  ;;  %v1219_v36 = vmul.f32 %v2102_v2, %v1217_v7 }
  0xff   : > { %v1662_v38 = vpack.c.bf16 %v1218_v35, %v1210_v32  ;;  %v1223_v39 = vpop.permute.xlu1 %1222  ;;  %v1660_v40 = vpack.c.bf16 %v1219_v36, %v1211_v33 }
 0x100   : > { %v1221_v41 = vpop.permute.xlu0 %1220 }
 0x101   : > { %1661 = vmatprep.subr.bf16.mxu0 %v1660_v40  ;;  %v1224_v42 = vsel %vm361_vm10, %v1221_v41, %v1223_v39  ;;  %v1225_v46 = vsel %vm361_vm10, %v1223_v39, %v1221_v41  ;;  %v291_v39 = vld [vmem:[%s2702_s4] sm:$0xff] }
 0x102   : > { %v1226_v47 = vmul.f32 %v2125_v28, %v1224_v42  ;;  %v1227_v49 = vmul.f32 %v2122_v37, %v1225_v46  ;;  %1663 = vmatpush1.bf16.msra.mxu0 %v1662_v38 }
 0x104   : > { %1244 = vmatprep.subr.mxu0 %v1227_v49 }
 0x106   : > { %1245 = vmatpush1.msra.mxu0 %v1226_v47 }
 0x107   : > { %1544 = vmatmul.mubr.msk.f32.vlgmr.msra.gmra.mrb[6].mxu0 %vm371_vm8, %v2140_v54 }
 0x111   : > { %v2299_v50 = vpop.permute.xlu0 %368 }
 0x17a   : > { %v441_v51 = vpop.f32.mrb[0].mxu0 }
 0x17b   : > { %v442_v52 = vadd.f32 %v441_v51, %v2299_v50  ;;  %v443_v53 = vpop.f32.mrb[1].mxu0 }
 0x17c   : > { %v444_v4 = vadd.f32 %v443_v53, %v2299_v50 }
 0x17d   : > { %v2302_v55 = vmax.f32 %v442_v52, 0.0 }
 0x17e   : > { %v2309_v3 = vmax.f32 %v444_v4, 0.0 }
 0x17f   : > { %456 = vrot.lane.b32.xlu0 %v2302_v55, %s1716_s25  ;;  %448 = vrot.lane.b32.xlu1 %v2302_v55, %s1717_s26 }
 0x183   : > { %464 = vrot.lane.b32.xlu0 %v2302_v55, %s1718_s27  ;;  %450 = vrot.lane.b32.xlu1 %v2309_v3, %s1717_s26 }
 0x187   : > { %472 = vrot.lane.b32.xlu0 %v2302_v55, %s1719_s28  ;;  %458 = vrot.lane.b32.xlu1 %v2309_v3, %s1716_s25 }
 0x18b   : > { %480 = vrot.lane.b32.xlu0 %v2302_v55, %s1720_s29  ;;  %466 = vrot.lane.b32.xlu1 %v2309_v3, %s1718_s27 }
 0x18f   : > { %488 = vrot.lane.b32.xlu0 %v2302_v55, %s1721_s30  ;;  %474 = vrot.lane.b32.xlu1 %v2309_v3, %s1719_s28 }
 0x193   : > { %496 = vrot.lane.b32.xlu0 %v2302_v55, %s1722_s6  ;;  %482 = vrot.lane.b32.xlu1 %v2309_v3, %s1720_s29 }
 0x197   : > { %504 = vrot.lane.b32.xlu0 %v2302_v55, %s1723_s7  ;;  %490 = vrot.lane.b32.xlu1 %v2309_v3, %s1721_s30 }
 0x19a   : > { %v730_v54 = vpop.f32.mrb[2].mxu0 }
 0x19b   : > { %v731_v56 = vadd.f32 %v730_v54, %v2299_v50  ;;  %v732_v57 = vpop.f32.mrb[3].mxu0  ;;  %498 = vrot.lane.b32.xlu1 %v2309_v3, %s1722_s6 }
 0x19c   : > { %v733_v61 = vadd.f32 %v732_v57, %v2299_v50 }
 0x19d   : > { %v2338_v60 = vmax.f32 %v731_v56, 0.0 }
 0x19e   : > { %v2345_v62 = vmax.f32 %v733_v61, 0.0 }
 0x19f   : > { %737 = vrot.lane.b32.xlu0 %v2338_v60, %s1717_s26  ;;  %506 = vrot.lane.b32.xlu1 %v2309_v3, %s1723_s7 }
 0x1a3   : > { %745 = vrot.lane.b32.xlu0 %v2338_v60, %s1716_s25  ;;  %739 = vrot.lane.b32.xlu1 %v2345_v62, %s1717_s26 }
 0x1a7   : > { %753 = vrot.lane.b32.xlu0 %v2338_v60, %s1718_s27  ;;  %747 = vrot.lane.b32.xlu1 %v2345_v62, %s1716_s25 }
 0x1ab   : > { %761 = vrot.lane.b32.xlu0 %v2338_v60, %s1719_s28  ;;  %755 = vrot.lane.b32.xlu1 %v2345_v62, %s1718_s27 }
 0x1af   : > { %769 = vrot.lane.b32.xlu0 %v2338_v60, %s1720_s29  ;;  %763 = vrot.lane.b32.xlu1 %v2345_v62, %s1719_s28 }
 0x1b3   : > { %777 = vrot.lane.b32.xlu0 %v2338_v60, %s1721_s30  ;;  %771 = vrot.lane.b32.xlu1 %v2345_v62, %s1720_s29 }
 0x1b7   : > { %785 = vrot.lane.b32.xlu0 %v2338_v60, %s1722_s6  ;;  %779 = vrot.lane.b32.xlu1 %v2345_v62, %s1721_s30 }
 0x1ba   : > { %v1012_v63 = vpop.f32.mrb[4].mxu0 }
 0x1bb   : > { %v1013_v9 = vadd.f32 %v1012_v63, %v2299_v50  ;;  %v1014_v12 = vpop.f32.mrb[5].mxu0  ;;  %793 = vrot.lane.b32.xlu0 %v2338_v60, %s1723_s7  ;;  %787 = vrot.lane.b32.xlu1 %v2345_v62, %s1722_s6 }
 0x1bc   : > { %v1015_v15 = vadd.f32 %v1014_v12, %v2299_v50 }
 0x1bd   : > { %v2376_v14 = vmax.f32 %v1013_v9, 0.0 }
 0x1be   : > { %v2383_v16 = vmax.f32 %v1015_v15, 0.0 }
 0x1bf   : > { %1019 = vrot.lane.b32.xlu0 %v2376_v14, %s1717_s26  ;;  %795 = vrot.lane.b32.xlu1 %v2345_v62, %s1723_s7 }
 0x1c3   : > { %1027 = vrot.lane.b32.xlu0 %v2376_v14, %s1716_s25  ;;  %1021 = vrot.lane.b32.xlu1 %v2383_v16, %s1717_s26 }
 0x1c7   : > { %1035 = vrot.lane.b32.xlu0 %v2376_v14, %s1718_s27  ;;  %1029 = vrot.lane.b32.xlu1 %v2383_v16, %s1716_s25 }
 0x1cb   : > { %1043 = vrot.lane.b32.xlu0 %v2376_v14, %s1719_s28  ;;  %1037 = vrot.lane.b32.xlu1 %v2383_v16, %s1718_s27 }
 0x1cf   : > { %1051 = vrot.lane.b32.xlu0 %v2376_v14, %s1720_s29  ;;  %1045 = vrot.lane.b32.xlu1 %v2383_v16, %s1719_s28 }
 0x1d3   : > { %1059 = vrot.lane.b32.xlu0 %v2376_v14, %s1721_s30  ;;  %1053 = vrot.lane.b32.xlu1 %v2383_v16, %s1720_s29 }
 0x1d7   : > { %1067 = vrot.lane.b32.xlu0 %v2376_v14, %s1722_s6  ;;  %1061 = vrot.lane.b32.xlu1 %v2383_v16, %s1721_s30 }
 0x1da   : > { %v1294_v17 = vpop.f32.mrb[6].mxu0 }
 0x1db   : > { %v1295_v11 = vadd.f32 %v1294_v17, %v2299_v50  ;;  %v1296_v6 = vpop.f32.mrb[7].mxu0  ;;  %1075 = vrot.lane.b32.xlu0 %v2376_v14, %s1723_s7  ;;  %1069 = vrot.lane.b32.xlu1 %v2383_v16, %s1722_s6 }
 0x1dc   : > { %v1297_v13 = vadd.f32 %v1296_v6, %v2299_v50 }
 0x1dd   : > { %v2414_v5 = vmax.f32 %v1295_v11, 0.0 }
 0x1de   : > { %v2421_v19 = vmax.f32 %v1297_v13, 0.0 }
 0x1df   : > { %1301 = vrot.lane.b32.xlu0 %v2414_v5, %s1717_s26  ;;  %1077 = vrot.lane.b32.xlu1 %v2383_v16, %s1723_s7 }
 0x1e3   : > { %1309 = vrot.lane.b32.xlu0 %v2414_v5, %s1716_s25  ;;  %1303 = vrot.lane.b32.xlu1 %v2421_v19, %s1717_s26 }
 0x1e7   : > { %1317 = vrot.lane.b32.xlu0 %v2414_v5, %s1718_s27  ;;  %1311 = vrot.lane.b32.xlu1 %v2421_v19, %s1716_s25 }
 0x1eb   : > { %1325 = vrot.lane.b32.xlu0 %v2414_v5, %s1719_s28  ;;  %1319 = vrot.lane.b32.xlu1 %v2421_v19, %s1718_s27 }
 0x1ef   : > { %1333 = vrot.lane.b32.xlu0 %v2414_v5, %s1720_s29  ;;  %1327 = vrot.lane.b32.xlu1 %v2421_v19, %s1719_s28 }
 0x1f1   : > { %v457_v21 = vpop.permute.xlu0 %456  ;;  %v449_v18 = vpop.permute.xlu1 %448 }
 0x1f3   : > { %1341 = vrot.lane.b32.xlu0 %v2414_v5, %s1721_s30  ;;  %1335 = vrot.lane.b32.xlu1 %v2421_v19, %s1720_s29 }
 0x1f5   : > { %v465_v26 = vpop.permute.xlu0 %464  ;;  %v451_v27 = vpop.permute.xlu1 %450 }
 0x1f6   : > { %v453_v31 = vsel %vm298_vm7, %v451_v27, %v449_v18  ;;  %v452_v32 = vsel %vm298_vm7, %v449_v18, %v451_v27 }
 0x1f7   : > { %1349 = vrot.lane.b32.xlu0 %v2414_v5, %s1722_s6  ;;  %1343 = vrot.lane.b32.xlu1 %v2421_v19, %s1721_s30  ;;  %v454_v29 = vmul.f32 %v1967_v25, %v453_v31  ;;  %v455_v36 = vmul.f32 %v1959_v23, %v452_v32 }
 0x1f9   : > { %v473_v33 = vpop.permute.xlu0 %472  ;;  %v459_v34 = vpop.permute.xlu1 %458 }
 0x1fa   : > { %v460_v8 = vsel %vm307_vm6, %v457_v21, %v459_v34  ;;  %v461_v7 = vsel %vm307_vm6, %v459_v34, %v457_v21 }
 0x1fb   : > { %v462_v35 = vmul.f32 %v1980_v30, %v461_v7  ;;  %1357 = vrot.lane.b32.xlu0 %v2414_v5, %s1723_s7  ;;  %1351 = vrot.lane.b32.xlu1 %v2421_v19, %s1722_s6  ;;  %v463_v38 = vmul.f32 %v1964_v24, %v460_v8 }
 0x1fd   : > { %v481_v40 = vpop.permute.xlu0 %480  ;;  %v467_v41 = vpop.permute.xlu1 %466  ;;  %v1568_v42 = vpack.c.bf16 %v463_v38, %v455_v36  ;;  %v1570_v46 = vpack.c.bf16 %v462_v35, %v454_v29 }
 0x1fe   : > { %v468_v47 = vsel %vm316_vm12, %v465_v26, %v467_v41  ;;  %v469_v49 = vsel %vm316_vm12, %v467_v41, %v465_v26 }
 0x1ff   : > { %514 = vperm.xlu0 %1698, %v291_v39   ;;  %1359 = vrot.lane.b32.xlu1 %v2421_v19, %s1723_s7  ;;  %v470_v4 = vmul.f32 %v2008_v43, %v469_v49  ;;  %v471_v54 = vmul.f32 %v2019_v45, %v468_v47  ;;  %v2509_v49 = vld [vmem:[%s2701_s3] sm:$0xff] }
 0x200   : > { %1569 = vmatprep.subr.bf16.mxu1 %v1568_v42 }
 0x201   : > { %1571 = vmatpush1.bf16.msra.mxu1 %v1570_v46  ;;  %v489_v50 = vpop.permute.xlu0 %488  ;;  %v475_v51 = vpop.permute.xlu1 %474 }
 0x202   : > { %v476_v52 = vsel %vm325_vm13, %v473_v33, %v475_v51  ;;  %v477_v53 = vsel %vm325_vm13, %v475_v51, %v473_v33 }
 0x203   : > { %v478_v56 = vmul.f32 %v2015_v44, %v477_v53  ;;  %v479_v57 = vmul.f32 %v2030_v48, %v476_v52 }
 0x205   : > { %v483_v61 = vpop.permute.xlu1 %482  ;;  %v1572_v63 = vpack.c.bf16 %v479_v57, %v471_v54  ;;  %v1574_v9 = vpack.c.bf16 %v478_v56, %v470_v4  ;;  %v497_v17 = vpop.permute.xlu0 %496 }
 0x206   : > { %v484_v12 = vsel %vm334_vm14, %v481_v40, %v483_v61  ;;  %v485_v15 = vsel %vm334_vm14, %v483_v61, %v481_v40 }
 0x207   : > { %v486_v11 = vmul.f32 %v2047_v58, %v484_v12  ;;  %v487_v6 = vmul.f32 %v2052_v59, %v485_v15  ;;  %1573 = vmatprep.subr.bf16.mxu1 %v1572_v63 }
 0x208   : > { %1575 = vmatpush1.bf16.msra.mxu1 %v1574_v9 }
 0x209   : > { %v491_v13 = vpop.permute.xlu1 %490  ;;  %v1576_v21 = vpack.c.bf16 %v487_v6, %v2309_v3  ;;  %v1578_v18 = vpack.c.bf16 %v486_v11, %v2302_v55  ;;  %v505_v31 = vpop.permute.xlu0 %504 }
 0x20a   : > { %v492_v26 = vsel %vm343_vm5, %v489_v50, %v491_v13  ;;  %v493_v27 = vsel %vm343_vm5, %v491_v13, %v489_v50 }
 0x20b   : > { %1577 = vmatprep.subr.bf16.mxu1 %v1576_v21  ;;  %v494_v3 = vmul.f32 %v2084_v22, %v492_v26  ;;  %v495_v55 = vmul.f32 %v2087_v20, %v493_v27 }
 0x20c   : > { %1579 = vmatpush1.bf16.msra.mxu1 %v1578_v18 }
 0x20d   : > { %v499_v32 = vpop.permute.xlu1 %498 }
 0x20e   : > { %v500_v33 = vsel %vm352_vm3, %v497_v17, %v499_v32  ;;  %v501_v34 = vsel %vm352_vm3, %v499_v32, %v497_v17 }
 0x20f   : > { %v502_v29 = vmul.f32 %v2097_v1, %v500_v33  ;;  %v503_v8 = vmul.f32 %v2102_v2, %v501_v34 }
 0x211   : > { %v738_v7 = vpop.permute.xlu0 %737  ;;  %v507_v35 = vpop.permute.xlu1 %506  ;;  %v1580_v36 = vpack.c.bf16 %v503_v8, %v495_v55  ;;  %v1582_v38 = vpack.c.bf16 %v502_v29, %v494_v3 }
 0x212   : > { %v509_v39 = vsel %vm361_vm10, %v507_v35, %v505_v31  ;;  %v508_v40 = vsel %vm361_vm10, %v505_v31, %v507_v35 }
 0x213   : > { %v511_v41 = vmul.f32 %v2122_v37, %v509_v39  ;;  %1581 = vmatprep.subr.bf16.mxu1 %v1580_v36  ;;  %v510_v47 = vmul.f32 %v2125_v28, %v508_v40 }
 0x214   : > { %1583 = vmatpush1.bf16.msra.mxu1 %v1582_v38 }
 0x215   : > { %v746_v42 = vpop.permute.xlu0 %745  ;;  %536 = vmatprep.subr.mxu1 %v511_v41  ;;  %v740_v46 = vpop.permute.xlu1 %739 }
 0x216   : > { %v741_v50 = vsel %vm298_vm7, %v738_v7, %v740_v46  ;;  %v742_v51 = vsel %vm298_vm7, %v740_v46, %v738_v7 }
 0x217   : > { %v743_v56 = vmul.f32 %v1967_v25, %v742_v51  ;;  %v744_v57 = vmul.f32 %v1959_v23, %v741_v50 }
 0x218   : > { %537 = vmatpush1.msra.mxu1 %v510_v47 }
 0x219   : > { %v754_v52 = vpop.permute.xlu0 %753  ;;  %1529 = vmatmul.mubr.msk.f32.vlgmr.msra.gmra.mrb[0].mxu1 %vm371_vm8, %v2509_v49  ;;  %v748_v53 = vpop.permute.xlu1 %747 }
 0x21a   : > { %v749_v4 = vsel %vm307_vm6, %v746_v42, %v748_v53  ;;  %v750_v54 = vsel %vm307_vm6, %v748_v53, %v746_v42  ;;  %865 = vmatprep.mubr.f32.mxu1 %v1715_v0 }
 0x21b   : > { %v751_v61 = vmul.f32 %v1980_v30, %v750_v54  ;;  %v752_v63 = vmul.f32 %v1964_v24, %v749_v4 }
 0x21d   : > { %v1602_v9 = vpack.c.bf16 %v751_v61, %v743_v56  ;;  %v762_v12 = vpop.permute.xlu0 %761  ;;  %v756_v15 = vpop.permute.xlu1 %755  ;;  %v1600_v17 = vpack.c.bf16 %v752_v63, %v744_v57 }
 0x21e   : > { %v757_v11 = vsel %vm316_vm12, %v754_v52, %v756_v15  ;;  %v758_v6 = vsel %vm316_vm12, %v756_v15, %v754_v52 }
 0x21f   : > { %1601 = vmatprep.subr.bf16.mxu1 %v1600_v17  ;;  %v759_v27 = vmul.f32 %v2008_v43, %v758_v6  ;;  %v760_v31 = vmul.f32 %v2019_v45, %v757_v11 }
 0x220   : > { %1603 = vmatpush1.bf16.msra.mxu1 %v1602_v9 }
 0x221   : > { %v770_v13 = vpop.permute.xlu0 %769  ;;  %v764_v21 = vpop.permute.xlu1 %763 }
 0x222   : > { %v765_v18 = vsel %vm325_vm13, %v762_v12, %v764_v21  ;;  %v766_v26 = vsel %vm325_vm13, %v764_v21, %v762_v12 }
 0x223   : > { %v767_v32 = vmul.f32 %v2015_v44, %v766_v26  ;;  %v768_v33 = vmul.f32 %v2030_v48, %v765_v18 }
 0x225   : > { %v1606_v34 = vpack.c.bf16 %v767_v32, %v759_v27  ;;  %v778_v3 = vpop.permute.xlu0 %777  ;;  %v772_v55 = vpop.permute.xlu1 %771  ;;  %v1604_v29 = vpack.c.bf16 %v768_v33, %v760_v31 }
 0x226   : > { %v773_v8 = vsel %vm334_vm14, %v770_v13, %v772_v55  ;;  %v774_v7 = vsel %vm334_vm14, %v772_v55, %v770_v13 }
 0x227   : > { %v775_v35 = vmul.f32 %v2047_v58, %v773_v8  ;;  %v776_v36 = vmul.f32 %v2052_v59, %v774_v7  ;;  %1605 = vmatprep.subr.bf16.mxu1 %v1604_v29 }
 0x228   : > { %1607 = vmatpush1.bf16.msra.mxu1 %v1606_v34 }
 0x229   : > { %v1610_v38 = vpack.c.bf16 %v775_v35, %v2338_v60  ;;  %v786_v39 = vpop.permute.xlu0 %785  ;;  %v780_v40 = vpop.permute.xlu1 %779  ;;  %v1608_v41 = vpack.c.bf16 %v776_v36, %v2345_v62 }
 0x22a   : > { %v781_v42 = vsel %vm343_vm5, %v778_v3, %v780_v40  ;;  %v782_v46 = vsel %vm343_vm5, %v780_v40, %v778_v3 }
 0x22b   : > { %1609 = vmatprep.subr.bf16.mxu1 %v1608_v41  ;;  %v783_v52 = vmul.f32 %v2084_v22, %v781_v42  ;;  %v784_v62 = vmul.f32 %v2087_v20, %v782_v46 }
 0x22c   : > { %1611 = vmatpush1.bf16.msra.mxu1 %v1610_v38 }
 0x22d   : > { %v794_v47 = vpop.permute.xlu0 %793  ;;  %v788_v50 = vpop.permute.xlu1 %787 }
 0x22e   : > { %v789_v51 = vsel %vm352_vm3, %v786_v39, %v788_v50  ;;  %v790_v60 = vsel %vm352_vm3, %v788_v50, %v786_v39 }
 0x22f   : > { %v791_v53 = vmul.f32 %v2097_v1, %v789_v51  ;;  %v792_v4 = vmul.f32 %v2102_v2, %v790_v60 }
 0x231   : > { %v1614_v54 = vpack.c.bf16 %v791_v53, %v783_v52  ;;  %v1020_v56 = vpop.permute.xlu0 %1019  ;;  %v796_v57 = vpop.permute.xlu1 %795  ;;  %v1612_v61 = vpack.c.bf16 %v792_v4, %v784_v62 }
 0x232   : > { %v798_v63 = vsel %vm361_vm10, %v796_v57, %v794_v47  ;;  %v797_v9 = vsel %vm361_vm10, %v794_v47, %v796_v57 }
 0x233   : > { %v800_v12 = vmul.f32 %v2122_v37, %v798_v63  ;;  %1613 = vmatprep.subr.bf16.mxu1 %v1612_v61  ;;  %v799_v11 = vmul.f32 %v2125_v28, %v797_v9 }
 0x234   : > { %1615 = vmatpush1.bf16.msra.mxu1 %v1614_v54 }
 0x235   : > { %v1028_v15 = vpop.permute.xlu0 %1027  ;;  %817 = vmatprep.subr.mxu1 %v800_v12  ;;  %v1022_v17 = vpop.permute.xlu1 %1021 }
 0x236   : > { %v1023_v6 = vsel %vm298_vm7, %v1020_v56, %v1022_v17  ;;  %v1024_v13 = vsel %vm298_vm7, %v1022_v17, %v1020_v56 }
 0x237   : > { %v1025_v31 = vmul.f32 %v1967_v25, %v1024_v13  ;;  %v1026_v32 = vmul.f32 %v1959_v23, %v1023_v6 }
 0x238   : > { %818 = vmatpush1.msra.mxu1 %v799_v11 }
 0x239   : > { %v1036_v21 = vpop.permute.xlu0 %1035  ;;  %1533 = vmatmul.mubr.msk.f32.vlgmr.msra.gmra.mrb[2].mxu1 %vm371_vm8, %v2509_v49  ;;  %v1030_v18 = vpop.permute.xlu1 %1029 }
 0x23a   : > { %v1031_v26 = vsel %vm307_vm6, %v1028_v15, %v1030_v18  ;;  %v1032_v27 = vsel %vm307_vm6, %v1030_v18, %v1028_v15  ;;  %1147 = vmatprep.mubr.f32.mxu1 %v1715_v0 }
 0x23b   : > { %v1033_v33 = vmul.f32 %v1980_v30, %v1032_v27  ;;  %v1034_v34 = vmul.f32 %v1964_v24, %v1031_v26 }
 0x23d   : > { %v1634_v3 = vpack.c.bf16 %v1033_v33, %v1025_v31  ;;  %v1044_v55 = vpop.permute.xlu0 %1043  ;;  %v1038_v29 = vpop.permute.xlu1 %1037  ;;  %v1632_v8 = vpack.c.bf16 %v1034_v34, %v1026_v32 }
 0x23e   : > { %v1039_v7 = vsel %vm316_vm12, %v1036_v21, %v1038_v29  ;;  %v1040_v35 = vsel %vm316_vm12, %v1038_v29, %v1036_v21 }
 0x23f   : > { %1633 = vmatprep.subr.bf16.mxu1 %v1632_v8  ;;  %v1041_v41 = vmul.f32 %v2008_v43, %v1040_v35  ;;  %v1042_v42 = vmul.f32 %v2019_v45, %v1039_v7 }
 0x240   : > { %1635 = vmatpush1.bf16.msra.mxu1 %v1634_v3 }
 0x241   : > { %v1052_v36 = vpop.permute.xlu0 %1051  ;;  %v1046_v38 = vpop.permute.xlu1 %1045 }
 0x242   : > { %v1047_v39 = vsel %vm325_vm13, %v1044_v55, %v1046_v38  ;;  %v1048_v40 = vsel %vm325_vm13, %v1046_v38, %v1044_v55 }
 0x243   : > { %v1049_v46 = vmul.f32 %v2015_v44, %v1048_v40  ;;  %v1050_v47 = vmul.f32 %v2030_v48, %v1047_v39 }
 0x245   : > { %v1638_v50 = vpack.c.bf16 %v1049_v46, %v1041_v41  ;;  %v1060_v51 = vpop.permute.xlu0 %1059  ;;  %v1054_v60 = vpop.permute.xlu1 %1053  ;;  %v1636_v52 = vpack.c.bf16 %v1050_v47, %v1042_v42 }
 0x246   : > { %v1055_v62 = vsel %vm334_vm14, %v1052_v36, %v1054_v60  ;;  %v1056_v53 = vsel %vm334_vm14, %v1054_v60, %v1052_v36 }
 0x247   : > { %v1057_v4 = vmul.f32 %v2047_v58, %v1055_v62  ;;  %v1058_v54 = vmul.f32 %v2052_v59, %v1056_v53  ;;  %1637 = vmatprep.subr.bf16.mxu1 %v1636_v52 }
 0x248   : > { %1639 = vmatpush1.bf16.msra.mxu1 %v1638_v50 }
 0x249   : > { %v1642_v56 = vpack.c.bf16 %v1057_v4, %v2376_v14  ;;  %v1068_v57 = vpop.permute.xlu0 %1067  ;;  %v1062_v61 = vpop.permute.xlu1 %1061  ;;  %v1640_v63 = vpack.c.bf16 %v1058_v54, %v2383_v16 }
 0x24a   : > { %v1063_v9 = vsel %vm343_vm5, %v1060_v51, %v1062_v61  ;;  %v1064_v12 = vsel %vm343_vm5, %v1062_v61, %v1060_v51 }
 0x24b   : > { %1641 = vmatprep.subr.bf16.mxu1 %v1640_v63  ;;  %v1065_v6 = vmul.f32 %v2084_v22, %v1063_v9  ;;  %v1066_v16 = vmul.f32 %v2087_v20, %v1064_v12 }
 0x24c   : > { %1643 = vmatpush1.bf16.msra.mxu1 %v1642_v56 }
 0x24d   : > { %v1076_v15 = vpop.permute.xlu0 %1075  ;;  %v1070_v17 = vpop.permute.xlu1 %1069 }
 0x24e   : > { %v1071_v11 = vsel %vm352_vm3, %v1068_v57, %v1070_v17  ;;  %v1072_v14 = vsel %vm352_vm3, %v1070_v17, %v1068_v57 }
 0x24f   : > { %v1073_v13 = vmul.f32 %v2097_v1, %v1071_v11  ;;  %v1074_v21 = vmul.f32 %v2102_v2, %v1072_v14 }
 0x251   : > { %v1646_v18 = vpack.c.bf16 %v1073_v13, %v1065_v6  ;;  %v1302_v26 = vpop.permute.xlu0 %1301  ;;  %v1078_v27 = vpop.permute.xlu1 %1077  ;;  %v1644_v31 = vpack.c.bf16 %v1074_v21, %v1066_v16 }
 0x252   : > { %v1080_v32 = vsel %vm361_vm10, %v1078_v27, %v1076_v15  ;;  %v1079_v33 = vsel %vm361_vm10, %v1076_v15, %v1078_v27 }
 0x253   : > { %v1082_v34 = vmul.f32 %v2122_v37, %v1080_v32  ;;  %1645 = vmatprep.subr.bf16.mxu1 %v1644_v31  ;;  %v1081_v29 = vmul.f32 %v2125_v28, %v1079_v33 }
 0x254   : > { %1647 = vmatpush1.bf16.msra.mxu1 %v1646_v18 }
 0x255   : > { %v1310_v3 = vpop.permute.xlu0 %1309  ;;  %1099 = vmatprep.subr.mxu1 %v1082_v34  ;;  %v1304_v55 = vpop.permute.xlu1 %1303 }
 0x256   : > { %v1305_v8 = vsel %vm298_vm7, %v1302_v26, %v1304_v55  ;;  %v1306_v7 = vsel %vm298_vm7, %v1304_v55, %v1302_v26 }
 0x257   : > { %v1307_v40 = vmul.f32 %v1967_v25, %v1306_v7  ;;  %v1308_v41 = vmul.f32 %v1959_v23, %v1305_v8 }
 0x258   : > { %1100 = vmatpush1.msra.mxu1 %v1081_v29 }
 0x259   : > { %v1318_v35 = vpop.permute.xlu0 %1317  ;;  %1539 = vmatmul.mubr.msk.f32.vlgmr.msra.gmra.mrb[4].mxu1 %vm371_vm8, %v2509_v49  ;;  %v1312_v36 = vpop.permute.xlu1 %1311 }
 0x25a   : > { %v1313_v38 = vsel %vm307_vm6, %v1310_v3, %v1312_v36  ;;  %v1314_v39 = vsel %vm307_vm6, %v1312_v36, %v1310_v3  ;;  %1429 = vmatprep.mubr.f32.mxu1 %v1715_v0  ;;  %v1699_v3 = vld [vmem:[%s1773_s24] sm:$0xff] }
 0x25b   : > { %v1315_v42 = vmul.f32 %v1980_v30, %v1314_v39  ;;  %v1316_v46 = vmul.f32 %v1964_v24, %v1313_v38  ;;  %v1701_v38 = vld [vmem:[%s1773_s24 + $0x10] sm:$0xff] }
 0x25d   : > { %v1666_v47 = vpack.c.bf16 %v1315_v42, %v1307_v40  ;;  %v1326_v50 = vpop.permute.xlu0 %1325  ;;  %v1320_v51 = vpop.permute.xlu1 %1319  ;;  %v1664_v60 = vpack.c.bf16 %v1316_v46, %v1308_v41  ;;  %v1702_v40 = vld [vmem:[%s1773_s24 + $0x18] sm:$0xff] }
 0x25e   : > { %v1321_v52 = vsel %vm316_vm12, %v1318_v35, %v1320_v51  ;;  %v1322_v62 = vsel %vm316_vm12, %v1320_v51, %v1318_v35 }
 0x25f   : > { %1665 = vmatprep.subr.bf16.mxu1 %v1664_v60  ;;  %v1323_v30 = vmul.f32 %v2008_v43, %v1322_v62  ;;  %v1324_v53 = vmul.f32 %v2019_v45, %v1321_v52  ;;  %v1703_v52 = vld [vmem:[%s1773_s24 + $0x20] sm:$0xff] }
 0x260   : > { %1667 = vmatpush1.bf16.msra.mxu1 %v1666_v47 }
 0x261   : > { %v1334_v0 = vpop.permute.xlu0 %1333  ;;  %v1328_v25 = vpop.permute.xlu1 %1327 }
 0x262   : > { %v1329_v23 = vsel %vm325_vm13, %v1326_v50, %v1328_v25  ;;  %v1330_v24 = vsel %vm325_vm13, %v1328_v25, %v1326_v50 }
 0x263   : > { %v1331_v4 = vmul.f32 %v2015_v44, %v1330_v24  ;;  %v1332_v54 = vmul.f32 %v2030_v48, %v1329_v23 }
 0x265   : > { %v1670_v56 = vpack.c.bf16 %v1331_v4, %v1323_v30  ;;  %v1342_v57 = vpop.permute.xlu0 %1341  ;;  %v1336_v61 = vpop.permute.xlu1 %1335  ;;  %v1668_v63 = vpack.c.bf16 %v1332_v54, %v1324_v53 }
 0x266   : > { %v1337_v9 = vsel %vm334_vm14, %v1334_v0, %v1336_v61  ;;  %v1338_v12 = vsel %vm334_vm14, %v1336_v61, %v1334_v0  ;;  %v1704_v0 = vld [vmem:[%s1773_s24 + $0x28] sm:$0xff]  ;;  %v1706_v61 = vld [vmem:[%s1773_s24 + $0x38] sm:$0xff] }
 0x267   : > { %v1339_v15 = vmul.f32 %v2047_v58, %v1337_v9  ;;  %v1340_v43 = vmul.f32 %v2052_v59, %v1338_v12  ;;  %1669 = vmatprep.subr.bf16.mxu1 %v1668_v63 }
 0x268   : > { %1671 = vmatpush1.bf16.msra.mxu1 %v1670_v56  ;;  %v1705_v56 = vld [vmem:[%s1773_s24 + $0x30] sm:$0xff] }
 0x269   : > { %v1674_v44 = vpack.c.bf16 %v1339_v15, %v2414_v5  ;;  %v1344_v45 = vpop.permute.xlu1 %1343  ;;  %v1672_v48 = vpack.c.bf16 %v1340_v43, %v2421_v19  ;;  %v1350_v17 = vpop.permute.xlu0 %1349 }
 0x26a   : > { %v1345_v11 = vsel %vm343_vm5, %v1342_v57, %v1344_v45  ;;  %v1346_v14 = vsel %vm343_vm5, %v1344_v45, %v1342_v57 }
 0x26b   : > { %1673 = vmatprep.subr.bf16.mxu1 %v1672_v48  ;;  %v1347_v5 = vmul.f32 %v2084_v22, %v1345_v11  ;;  %v1348_v19 = vmul.f32 %v2087_v20, %v1346_v14 }
 0x26c   : > { %1675 = vmatpush1.bf16.msra.mxu1 %v1674_v44 }
 0x26d   : > { %v1352_v6 = vpop.permute.xlu1 %1351  ;;  %v1358_v21 = vpop.permute.xlu0 %1357 }
 0x26e   : > { %v1353_v58 = vsel %vm352_vm3, %v1350_v17, %v1352_v6  ;;  %v1354_v59 = vsel %vm352_vm3, %v1352_v6, %v1350_v17 }
 0x26f   : > { %v1355_v16 = vmul.f32 %v2097_v1, %v1353_v58  ;;  %v1356_v13 = vmul.f32 %v2102_v2, %v1354_v59 }
 0x271   : > { %v1678_v18 = vpack.c.bf16 %v1355_v16, %v1347_v5  ;;  %v1360_v26 = vpop.permute.xlu1 %1359  ;;  %v1676_v27 = vpack.c.bf16 %v1356_v13, %v1348_v19 }
 0x272   : > { %v1362_v31 = vsel %vm361_vm10, %v1360_v26, %v1358_v21  ;;  %v1361_v32 = vsel %vm361_vm10, %v1358_v21, %v1360_v26 }
 0x273   : > { %v1364_v22 = vmul.f32 %v2122_v37, %v1362_v31  ;;  %1677 = vmatprep.subr.bf16.mxu1 %v1676_v27  ;;  %v1363_v20 = vmul.f32 %v2125_v28, %v1361_v32  ;;  %v1700_v37 = vld [vmem:[%s1773_s24 + $0x8] sm:$0xff] }
 0x274   : > { %1679 = vmatpush1.bf16.msra.mxu1 %v1678_v18 }
 0x275   : > { %1381 = vmatprep.subr.mxu1 %v1364_v22 }
 0x278   : > { %1382 = vmatpush1.msra.mxu1 %v1363_v20 }
 0x279   : > { %1545 = vmatmul.mubr.msk.f32.vlgmr.msra.gmra.mrb[6].mxu1 %vm371_vm8, %v2509_v49 }
 0x27e   : > { %v515_v1 = vpop.permute.xlu0 %514 }
 0x2ec   : > { %v586_v2 = vpop.f32.mrb[0].mxu1 }
 0x2ed   : > { %v587_v33 = vadd.f32 %v586_v2, %v515_v1  ;;  %v588_v34 = vpop.f32.mrb[1].mxu1 }
 0x2ee   : > { %v589_v10 = vadd.f32 %v588_v34, %v515_v1 }
 0x2ef   : > { %v591_v55 = vadd.f32 %v1699_v3, %v587_v33 }
 0x2f0   : > { %v592_v28 = vadd.f32 %v1700_v37, %v589_v10 }
 0x2f1   : > { %v593_v49 = vmax.f32 %v591_v55, 0.0 }
 0x2f2   : > { %v594_v29 = vmax.f32 %v592_v28, 0.0 }
 0x2f3   : > { %595 = vst [vmem:[%s2678_s19] sm:$0xff] %v593_v49 }
 0x2f4   : > { %596 = vst [vmem:[%s2678_s19 + $0x8] sm:$0xff] %v594_v29 }
 0x30c   : > { %v867_v8 = vpop.f32.mrb[2].mxu1 }
 0x30d   : > { %v868_v7 = vadd.f32 %v867_v8, %v515_v1  ;;  %v869_v35 = vpop.f32.mrb[3].mxu1 }
 0x30e   : > { %v870_v36 = vadd.f32 %v869_v35, %v515_v1 }
 0x30f   : > { %v872_v39 = vadd.f32 %v1701_v38, %v868_v7 }
 0x310   : > { %v873_v41 = vadd.f32 %v1702_v40, %v870_v36 }
 0x311   : > { %v874_v42 = vmax.f32 %v872_v39, 0.0 }
 0x312   : > { %v875_v46 = vmax.f32 %v873_v41, 0.0 }
 0x313   : > { %1534 = vst [vmem:[%s2678_s19 + $0x10] sm:$0xff] %v874_v42 }
 0x314   : > { %1535 = vst [vmem:[%s2678_s19 + $0x18] sm:$0xff] %v875_v46 }
 0x32c   : > { %v1149_v47 = vpop.f32.mrb[4].mxu1 }
 0x32d   : > { %v1150_v50 = vadd.f32 %v1149_v47, %v515_v1  ;;  %v1151_v51 = vpop.f32.mrb[5].mxu1 }
 0x32e   : > { %v1152_v60 = vadd.f32 %v1151_v51, %v515_v1 }
 0x32f   : > { %v1154_v62 = vadd.f32 %v1703_v52, %v1150_v50 }
 0x330   : > { %v1155_v25 = vadd.f32 %v1704_v0, %v1152_v60 }
 0x331   : > { %v1156_v23 = vmax.f32 %v1154_v62, 0.0 }
 0x332   : > { %v1157_v24 = vmax.f32 %v1155_v25, 0.0 }
 0x333   : > { %1540 = vst [vmem:[%s2678_s19 + $0x20] sm:$0xff] %v1156_v23 }
 0x334   : > { %1541 = vst [vmem:[%s2678_s19 + $0x28] sm:$0xff] %v1157_v24 }
 0x34c   : > { %v1431_v30 = vpop.f32.mrb[6].mxu1 }
 0x34d   : > { %v1432_v53 = vadd.f32 %v1431_v30, %v515_v1  ;;  %v1433_v4 = vpop.f32.mrb[7].mxu1 }
 0x34e   : > { %v1434_v54 = vadd.f32 %v1433_v4, %v515_v1 }
 0x34f   : > { %v1436_v57 = vadd.f32 %v1705_v56, %v1432_v53 }
 0x350   : > { %v1437_v63 = vadd.f32 %v1706_v61, %v1434_v54 }
 0x351   : > { %v1438_v9 = vmax.f32 %v1436_v57, 0.0 }
 0x352   : > { %v1439_v12 = vmax.f32 %v1437_v63, 0.0 }
 0x353   : > { %1546 = vst [vmem:[%s2678_s19 + $0x30] sm:$0xff] %v1438_v9 }
 0x354   : > { %1547 = vst [vmem:[%s2678_s19 + $0x38] sm:$0xff] %v1439_v12 }
 0x355 PF: > { %s15_s18 = sadd.s32 1, %s1713_s18  }
 0x356   : > { %p12_p4 = scmp.ge.s32.totalorder %s15_s18, 4  }
 0x358   :  { %14 = sbr.rel (!%p12_p4) target bundleno = 1 (0x1), region = 76 }

</bundles_post_ra>
